<compile_context>
chip_gen: v6e
topology: v6e:2x2x1
jax: 0.10.0
libtpu: 0.0.40
codegen_flags: <defaults>
</compile_context>

<pallas_src>
import jax
import jax.numpy as jnp
from jax.experimental import pallas as pl
from jax.experimental.pallas import tpu as pltpu


def _round_up(x, m):
    return ((x + m - 1) // m) * m


def gru_fc_kernel(x_ref, w_ih_ref, w_big_ref, b_ref, out_ref):
    """Fused GRU (T steps) + final Linear, eval-mode (dropout = identity).

    x_ref     : [T*BP, D]        bf16, time-major, batch padded to BP=8 sublanes
    w_ih_ref  : [D, 3*GP]        bf16, (W_ir|W_iz|W_in)^T, each gate lane-padded to GP
    w_big_ref : [GP, 3*GP + FCP] bf16, (W_hr|W_hz|W_hn)^T | W_fc^T; rows >= D are zero
    b_ref     : [1, 4*GP + FCP]  f32,  b_i(rz folded, 3*GP) | b_hn(GP) | b_fc(FCP)
    out_ref   : [BP, FCP]        f32
    """
    BP, FCP = out_ref.shape
    D = x_ref.shape[1]
    GP3 = w_ih_ref.shape[1]
    GP = GP3 // 3
    T = x_ref.shape[0] // BP

    w_big = w_big_ref[...]
    w_hh = w_big[:, :GP3]                    # [GP, 3*GP]  bf16 (vreg-aligned slice)
    w_fc = w_big[:, GP3:]                    # [GP, FCP]   bf16
    b_i = b_ref[:, :GP3]                     # [1, 3*GP]
    b_hn = b_ref[:, GP3:GP3 + GP]            # [1, GP]
    b_fc = b_ref[:, GP3 + GP:]               # [1, FCP]

    # ---- hoisted input projection: one bf16 matmul (off the serial chain) ----
    gi = jnp.dot(x_ref[...], w_ih_ref[...],
                 preferred_element_type=jnp.float32) + b_i          # [T*BP, 3*GP] f32

    # ---- recurrence: only h @ W_hh stays on the serial dependency chain ----
    h = jnp.zeros((BP, GP), jnp.float32)
    for t in range(T):                       # static full unroll (T small)
        gh = jnp.dot(h.astype(jnp.bfloat16), w_hh,
                     preferred_element_type=jnp.float32)            # [BP, 3*GP] f32
        gi_t = gi[t * BP:(t + 1) * BP, :]    # exact 8-sublane static extract
        rz = jax.nn.sigmoid(gi_t[:, :2 * GP] + gh[:, :2 * GP])      # one EUP push
        r = rz[:, :GP]
        z = rz[:, GP:]
        n = jnp.tanh(gi_t[:, 2 * GP:] + r * (gh[:, 2 * GP:] + b_hn))
        h = n + z * (h - n)                  # (1-z)*n + z*h, one fewer VPU op

    # ---- fc(emb.squeeze(0)); dropout == identity (eval mode); lane-dense out ----
    out_ref[...] = jnp.dot(h.astype(jnp.bfloat16), w_fc,
                           preferred_element_type=jnp.float32) + b_fc


def pack_params(raw, D):
    """Torch-layout GRU/Linear weights -> consolidated kernel layout (done once)."""
    GP = _round_up(D, 128)
    FCP = _round_up(D, 128)
    pad_c = GP - D
    w_ih, w_hh = raw["w_ih"], raw["w_hh"]        # [3D, D], gate order r, z, n
    b_ih, b_hh = raw["b_ih"], raw["b_hh"]        # [3D]

    def gate_cols(w, g):                         # -> [D, GP]  (W_g^T, lane-padded)
        return jnp.pad(w[g * D:(g + 1) * D, :].T, ((0, 0), (0, pad_c)))

    def gate_bias(b, g):                         # -> [GP]
        return jnp.pad(b[g * D:(g + 1) * D], (0, pad_c))

    w_ih_p = jnp.concatenate([gate_cols(w_ih, g) for g in range(3)], axis=1)    # [D, 3GP]
    w_hh_p = jnp.pad(
        jnp.concatenate([gate_cols(w_hh, g) for g in range(3)], axis=1),
        ((0, pad_c), (0, 0)))                                                   # [GP, 3GP]
    w_fc_p = jnp.pad(raw["w_fc"].T, ((0, pad_c), (0, FCP - D)))                 # [GP, FCP]
    w_big = jnp.concatenate([w_hh_p, w_fc_p], axis=1).astype(jnp.bfloat16)      # [GP, 3GP+FCP]

    # Fold b_hh into the hoisted projection bias for r/z gates; keep b_hn separate.
    b_i = jnp.concatenate([gate_bias(b_ih, 0) + gate_bias(b_hh, 0),
                           gate_bias(b_ih, 1) + gate_bias(b_hh, 1),
                           gate_bias(b_ih, 2)])                                 # [3GP]
    b_hn = gate_bias(b_hh, 2)                                                   # [GP]
    b_fc = jnp.pad(raw["b_fc"], (0, FCP - D))                                   # [FCP]
    b_all = jnp.concatenate([b_i, b_hn, b_fc])[None, :].astype(jnp.float32)     # [1, 4GP+FCP]

    return dict(w_ih=w_ih_p.astype(jnp.bfloat16), w_big=w_big, b_all=b_all)


@jax.jit
def style_embedding_estimator(inputs, packed):
    """inputs: [B, T, D] float32 -> [B, 1, D] (matches torch forward, eval mode)."""
    B, T, D = inputs.shape
    BP = _round_up(max(B, 1), 8)                 # sublane-pad the batch axis
    FCP = _round_up(D, 128)

    # All layout plumbing done here: time-major + batch pad + flatten + bf16 cast.
    x = jnp.transpose(inputs, (1, 0, 2))         # [T, B, D]
    x = jnp.pad(x, ((0, 0), (0, BP - B), (0, 0)))
    x = x.reshape(T * BP, D).astype(jnp.bfloat16)

    vmem = pl.BlockSpec(memory_space=pltpu.MemorySpace.VMEM)
    out = pl.pallas_call(
        gru_fc_kernel,
        out_shape=jax.ShapeDtypeStruct((BP, FCP), jnp.float32),
        in_specs=[vmem] * 4,
        out_specs=vmem,
    )(x, packed["w_ih"], packed["w_big"], packed["b_all"])
    return out[:B, None, :D]                     # slice pads away + unsqueeze(1)


def init_params(key, D):
    """Deterministic init; same shapes/layout as torch.nn.GRU / nn.Linear (hidden=D)."""
    ks = jax.random.split(key, 6)
    s = 1.0 / jnp.sqrt(D)
    return {
        "w_ih": jax.random.uniform(ks[0], (3 * D, D), jnp.float32, -s, s),  # weight_ih_l0
        "w_hh": jax.random.uniform(ks[1], (3 * D, D), jnp.float32, -s, s),  # weight_hh_l0
        "b_ih": jax.random.uniform(ks[2], (3 * D,), jnp.float32, -s, s),
        "b_hh": jax.random.uniform(ks[3], (3 * D,), jnp.float32, -s, s),
        "w_fc": jax.random.uniform(ks[4], (D, D), jnp.float32, -s, s),      # fc.weight
        "b_fc": jax.random.uniform(ks[5], (D,), jnp.float32, -s, s),
    }


def reference_forward(inputs, raw):
    """Pure-JAX f32 reference of the same GRU+FC math (torch gate order r, z, n)."""
    B, T, D = inputs.shape
    w_ih_t, w_hh_t = raw["w_ih"].T, raw["w_hh"].T
    b_ih, b_hh = raw["b_ih"], raw["b_hh"]
    h = jnp.zeros((B, D), jnp.float32)
    for t in range(T):
        x_t = inputs[:, t, :]
        gi = x_t @ w_ih_t + b_ih
        gh = h @ w_hh_t + b_hh
        r = jax.nn.sigmoid(gi[:, 0:D] + gh[:, 0:D])
        z = jax.nn.sigmoid(gi[:, D:2 * D] + gh[:, D:2 * D])
        n = jnp.tanh(gi[:, 2 * D:3 * D] + r * gh[:, 2 * D:3 * D])
        h = (1.0 - z) * n + z * h
    out = h @ raw["w_fc"].T + raw["b_fc"]
    return out[:, None, :]


if __name__ == "__main__":
    # hparams.symbols_embedding_dim = 32 ; batch = 2 ; seq = 8
    B, T, D = 2, 8, 32
    key = jax.random.PRNGKey(0)
    k_x, k_p = jax.random.split(key)
    x = jax.random.normal(k_x, (B, T, D), jnp.float32)

    raw = init_params(k_p, D)
    packed = pack_params(raw, D)

    # TODO(synk): `lengths`/pack_padded_sequence path not implemented (lengths=None only);
    #             dropout is identity (eval-mode semantics).
    out = style_embedding_estimator(x, packed)
    out = jax.block_until_ready(out)

    ref = reference_forward(x, raw)
    assert out.shape == (B, 1, D)
    # bf16 MXU operands (f32 accumulate) -> ~1e-2-level agreement vs f32 reference.
    assert jnp.allclose(out, ref, atol=3e-2, rtol=3e-2), float(
        jnp.max(jnp.abs(out - ref)))
    print("KERNEL_OK")
</pallas_src>

<mosaic_0001>
module attributes {stable_mosaic.version = 11 : i64} {
  func.func @gru_fc_kernel(%arg0: memref<64x32xbf16, #tpu.memory_space<vmem>>, %arg1: memref<32x384xbf16, #tpu.memory_space<vmem>>, %arg2: memref<128x512xbf16, #tpu.memory_space<vmem>>, %arg3: memref<1x640xf32, #tpu.memory_space<vmem>>, %arg4: memref<8x128xf32, #tpu.memory_space<vmem>>) attributes {dimension_semantics = [], scalar_prefetch = 0 : i64, scratch_operands = 0 : i64, tpu.core_type = #tpu.core_type<tc>} {
    %c0 = arith.constant 0 : index
    %c0_0 = arith.constant 0 : index
    %0 = vector.load %arg2[%c0, %c0_0] : memref<128x512xbf16, #tpu.memory_space<vmem>>, vector<128x512xbf16>
    %1 = vector.extract_strided_slice %0 {offsets = [0, 0], sizes = [128, 384], strides = [1, 1]} : vector<128x512xbf16> to vector<128x384xbf16>
    %2 = vector.extract_strided_slice %0 {offsets = [0, 384], sizes = [128, 128], strides = [1, 1]} : vector<128x512xbf16> to vector<128x128xbf16>
    %c0_1 = arith.constant 0 : index
    %c0_2 = arith.constant 0 : index
    %3 = vector.load %arg3[%c0_1, %c0_2] : memref<1x640xf32, #tpu.memory_space<vmem>>, vector<1x384xf32>
    %c0_3 = arith.constant 0 : index
    %c384 = arith.constant 384 : index
    %4 = vector.load %arg3[%c0_3, %c384] : memref<1x640xf32, #tpu.memory_space<vmem>>, vector<1x128xf32>
    %c0_4 = arith.constant 0 : index
    %c512 = arith.constant 512 : index
    %5 = vector.load %arg3[%c0_4, %c512] : memref<1x640xf32, #tpu.memory_space<vmem>>, vector<1x128xf32>
    %c0_5 = arith.constant 0 : index
    %c0_6 = arith.constant 0 : index
    %6 = vector.load %arg0[%c0_5, %c0_6] : memref<64x32xbf16, #tpu.memory_space<vmem>>, vector<64x32xbf16>
    %c0_7 = arith.constant 0 : index
    %c0_8 = arith.constant 0 : index
    %7 = vector.load %arg1[%c0_7, %c0_8] : memref<32x384xbf16, #tpu.memory_space<vmem>>, vector<32x384xbf16>
    %cst = arith.constant dense<0.000000e+00> : vector<64x384xf32>
    %8 = tpu.matmul %6, %7, %cst {dimension_numbers = #tpu.dot_dimension_numbers<[1], [0], [0], [1], [0, 0, 1, 1], [], []>} : vector<64x32xbf16>, vector<32x384xbf16>, vector<64x384xf32> -> vector<64x384xf32>
    %9 = vector.broadcast %3 : vector<1x384xf32> to vector<64x384xf32>
    %10 = arith.addf %8, %9 : vector<64x384xf32>
    %cst_9 = arith.constant 0.000000e+00 : f32
    %11 = vector.broadcast %cst_9 : f32 to vector<8x128xf32>
    %12 = arith.truncf %11 : vector<8x128xf32> to vector<8x128xbf16>
    %cst_10 = arith.constant dense<0.000000e+00> : vector<8x384xf32>
    %13 = tpu.matmul %12, %1, %cst_10 {dimension_numbers = #tpu.dot_dimension_numbers<[1], [0], [0], [1], [0, 0, 1, 1], [], []>} : vector<8x128xbf16>, vector<128x384xbf16>, vector<8x384xf32> -> vector<8x384xf32>
    %14 = vector.extract_strided_slice %10 {offsets = [0, 0], sizes = [8, 384], strides = [1, 1]} : vector<64x384xf32> to vector<8x384xf32>
    %15 = vector.extract_strided_slice %14 {offsets = [0, 0], sizes = [8, 256], strides = [1, 1]} : vector<8x384xf32> to vector<8x256xf32>
    %16 = vector.extract_strided_slice %13 {offsets = [0, 0], sizes = [8, 256], strides = [1, 1]} : vector<8x384xf32> to vector<8x256xf32>
    %17 = arith.addf %15, %16 : vector<8x256xf32>
    %18 = arith.negf %17 : vector<8x256xf32>
    %19 = math.exp %18 : vector<8x256xf32>
    %cst_11 = arith.constant 1.000000e+00 : f32
    %20 = vector.broadcast %cst_11 : f32 to vector<8x256xf32>
    %21 = arith.addf %20, %19 : vector<8x256xf32>
    %22 = arith.divf %20, %21 : vector<8x256xf32>
    %23 = vector.extract_strided_slice %22 {offsets = [0, 0], sizes = [8, 128], strides = [1, 1]} : vector<8x256xf32> to vector<8x128xf32>
    %24 = vector.extract_strided_slice %22 {offsets = [0, 128], sizes = [8, 128], strides = [1, 1]} : vector<8x256xf32> to vector<8x128xf32>
    %25 = vector.extract_strided_slice %14 {offsets = [0, 256], sizes = [8, 128], strides = [1, 1]} : vector<8x384xf32> to vector<8x128xf32>
    %26 = vector.extract_strided_slice %13 {offsets = [0, 256], sizes = [8, 128], strides = [1, 1]} : vector<8x384xf32> to vector<8x128xf32>
    %27 = vector.broadcast %4 : vector<1x128xf32> to vector<8x128xf32>
    %28 = arith.addf %26, %27 : vector<8x128xf32>
    %29 = arith.mulf %23, %28 : vector<8x128xf32>
    %30 = arith.addf %25, %29 : vector<8x128xf32>
    %31 = math.tanh %30 : vector<8x128xf32>
    %32 = arith.subf %11, %31 : vector<8x128xf32>
    %33 = arith.mulf %24, %32 : vector<8x128xf32>
    %34 = arith.addf %31, %33 : vector<8x128xf32>
    %35 = arith.truncf %34 : vector<8x128xf32> to vector<8x128xbf16>
    %cst_12 = arith.constant dense<0.000000e+00> : vector<8x384xf32>
    %36 = tpu.matmul %35, %1, %cst_12 {dimension_numbers = #tpu.dot_dimension_numbers<[1], [0], [0], [1], [0, 0, 1, 1], [], []>} : vector<8x128xbf16>, vector<128x384xbf16>, vector<8x384xf32> -> vector<8x384xf32>
    %37 = vector.extract_strided_slice %10 {offsets = [8, 0], sizes = [8, 384], strides = [1, 1]} : vector<64x384xf32> to vector<8x384xf32>
    %38 = vector.extract_strided_slice %37 {offsets = [0, 0], sizes = [8, 256], strides = [1, 1]} : vector<8x384xf32> to vector<8x256xf32>
    %39 = vector.extract_strided_slice %36 {offsets = [0, 0], sizes = [8, 256], strides = [1, 1]} : vector<8x384xf32> to vector<8x256xf32>
    %40 = arith.addf %38, %39 : vector<8x256xf32>
    %41 = arith.negf %40 : vector<8x256xf32>
    %42 = math.exp %41 : vector<8x256xf32>
    %cst_13 = arith.constant 1.000000e+00 : f32
    %43 = vector.broadcast %cst_13 : f32 to vector<8x256xf32>
    %44 = arith.addf %43, %42 : vector<8x256xf32>
    %45 = arith.divf %43, %44 : vector<8x256xf32>
    %46 = vector.extract_strided_slice %45 {offsets = [0, 0], sizes = [8, 128], strides = [1, 1]} : vector<8x256xf32> to vector<8x128xf32>
    %47 = vector.extract_strided_slice %45 {offsets = [0, 128], sizes = [8, 128], strides = [1, 1]} : vector<8x256xf32> to vector<8x128xf32>
    %48 = vector.extract_strided_slice %37 {offsets = [0, 256], sizes = [8, 128], strides = [1, 1]} : vector<8x384xf32> to vector<8x128xf32>
    %49 = vector.extract_strided_slice %36 {offsets = [0, 256], sizes = [8, 128], strides = [1, 1]} : vector<8x384xf32> to vector<8x128xf32>
    %50 = vector.broadcast %4 : vector<1x128xf32> to vector<8x128xf32>
    %51 = arith.addf %49, %50 : vector<8x128xf32>
    %52 = arith.mulf %46, %51 : vector<8x128xf32>
    %53 = arith.addf %48, %52 : vector<8x128xf32>
    %54 = math.tanh %53 : vector<8x128xf32>
    %55 = arith.subf %34, %54 : vector<8x128xf32>
    %56 = arith.mulf %47, %55 : vector<8x128xf32>
    %57 = arith.addf %54, %56 : vector<8x128xf32>
    %58 = arith.truncf %57 : vector<8x128xf32> to vector<8x128xbf16>
    %cst_14 = arith.constant dense<0.000000e+00> : vector<8x384xf32>
    %59 = tpu.matmul %58, %1, %cst_14 {dimension_numbers = #tpu.dot_dimension_numbers<[1], [0], [0], [1], [0, 0, 1, 1], [], []>} : vector<8x128xbf16>, vector<128x384xbf16>, vector<8x384xf32> -> vector<8x384xf32>
    %60 = vector.extract_strided_slice %10 {offsets = [16, 0], sizes = [8, 384], strides = [1, 1]} : vector<64x384xf32> to vector<8x384xf32>
    %61 = vector.extract_strided_slice %60 {offsets = [0, 0], sizes = [8, 256], strides = [1, 1]} : vector<8x384xf32> to vector<8x256xf32>
    %62 = vector.extract_strided_slice %59 {offsets = [0, 0], sizes = [8, 256], strides = [1, 1]} : vector<8x384xf32> to vector<8x256xf32>
    %63 = arith.addf %61, %62 : vector<8x256xf32>
    %64 = arith.negf %63 : vector<8x256xf32>
    %65 = math.exp %64 : vector<8x256xf32>
    %cst_15 = arith.constant 1.000000e+00 : f32
    %66 = vector.broadcast %cst_15 : f32 to vector<8x256xf32>
    %67 = arith.addf %66, %65 : vector<8x256xf32>
    %68 = arith.divf %66, %67 : vector<8x256xf32>
    %69 = vector.extract_strided_slice %68 {offsets = [0, 0], sizes = [8, 128], strides = [1, 1]} : vector<8x256xf32> to vector<8x128xf32>
    %70 = vector.extract_strided_slice %68 {offsets = [0, 128], sizes = [8, 128], strides = [1, 1]} : vector<8x256xf32> to vector<8x128xf32>
    %71 = vector.extract_strided_slice %60 {offsets = [0, 256], sizes = [8, 128], strides = [1, 1]} : vector<8x384xf32> to vector<8x128xf32>
    %72 = vector.extract_strided_slice %59 {offsets = [0, 256], sizes = [8, 128], strides = [1, 1]} : vector<8x384xf32> to vector<8x128xf32>
    %73 = vector.broadcast %4 : vector<1x128xf32> to vector<8x128xf32>
    %74 = arith.addf %72, %73 : vector<8x128xf32>
    %75 = arith.mulf %69, %74 : vector<8x128xf32>
    %76 = arith.addf %71, %75 : vector<8x128xf32>
    %77 = math.tanh %76 : vector<8x128xf32>
    %78 = arith.subf %57, %77 : vector<8x128xf32>
    %79 = arith.mulf %70, %78 : vector<8x128xf32>
    %80 = arith.addf %77, %79 : vector<8x128xf32>
    %81 = arith.truncf %80 : vector<8x128xf32> to vector<8x128xbf16>
    %cst_16 = arith.constant dense<0.000000e+00> : vector<8x384xf32>
    %82 = tpu.matmul %81, %1, %cst_16 {dimension_numbers = #tpu.dot_dimension_numbers<[1], [0], [0], [1], [0, 0, 1, 1], [], []>} : vector<8x128xbf16>, vector<128x384xbf16>, vector<8x384xf32> -> vector<8x384xf32>
    %83 = vector.extract_strided_slice %10 {offsets = [24, 0], sizes = [8, 384], strides = [1, 1]} : vector<64x384xf32> to vector<8x384xf32>
    %84 = vector.extract_strided_slice %83 {offsets = [0, 0], sizes = [8, 256], strides = [1, 1]} : vector<8x384xf32> to vector<8x256xf32>
    %85 = vector.extract_strided_slice %82 {offsets = [0, 0], sizes = [8, 256], strides = [1, 1]} : vector<8x384xf32> to vector<8x256xf32>
    %86 = arith.addf %84, %85 : vector<8x256xf32>
    %87 = arith.negf %86 : vector<8x256xf32>
    %88 = math.exp %87 : vector<8x256xf32>
    %cst_17 = arith.constant 1.000000e+00 : f32
    %89 = vector.broadcast %cst_17 : f32 to vector<8x256xf32>
    %90 = arith.addf %89, %88 : vector<8x256xf32>
    %91 = arith.divf %89, %90 : vector<8x256xf32>
    %92 = vector.extract_strided_slice %91 {offsets = [0, 0], sizes = [8, 128], strides = [1, 1]} : vector<8x256xf32> to vector<8x128xf32>
    %93 = vector.extract_strided_slice %91 {offsets = [0, 128], sizes = [8, 128], strides = [1, 1]} : vector<8x256xf32> to vector<8x128xf32>
    %94 = vector.extract_strided_slice %83 {offsets = [0, 256], sizes = [8, 128], strides = [1, 1]} : vector<8x384xf32> to vector<8x128xf32>
    %95 = vector.extract_strided_slice %82 {offsets = [0, 256], sizes = [8, 128], strides = [1, 1]} : vector<8x384xf32> to vector<8x128xf32>
    %96 = vector.broadcast %4 : vector<1x128xf32> to vector<8x128xf32>
    %97 = arith.addf %95, %96 : vector<8x128xf32>
    %98 = arith.mulf %92, %97 : vector<8x128xf32>
    %99 = arith.addf %94, %98 : vector<8x128xf32>
    %100 = math.tanh %99 : vector<8x128xf32>
    %101 = arith.subf %80, %100 : vector<8x128xf32>
    %102 = arith.mulf %93, %101 : vector<8x128xf32>
    %103 = arith.addf %100, %102 : vector<8x128xf32>
    %104 = arith.truncf %103 : vector<8x128xf32> to vector<8x128xbf16>
    %cst_18 = arith.constant dense<0.000000e+00> : vector<8x384xf32>
    %105 = tpu.matmul %104, %1, %cst_18 {dimension_numbers = #tpu.dot_dimension_numbers<[1], [0], [0], [1], [0, 0, 1, 1], [], []>} : vector<8x128xbf16>, vector<128x384xbf16>, vector<8x384xf32> -> vector<8x384xf32>
    %106 = vector.extract_strided_slice %10 {offsets = [32, 0], sizes = [8, 384], strides = [1, 1]} : vector<64x384xf32> to vector<8x384xf32>
    %107 = vector.extract_strided_slice %106 {offsets = [0, 0], sizes = [8, 256], strides = [1, 1]} : vector<8x384xf32> to vector<8x256xf32>
    %108 = vector.extract_strided_slice %105 {offsets = [0, 0], sizes = [8, 256], strides = [1, 1]} : vector<8x384xf32> to vector<8x256xf32>
    %109 = arith.addf %107, %108 : vector<8x256xf32>
    %110 = arith.negf %109 : vector<8x256xf32>
    %111 = math.exp %110 : vector<8x256xf32>
    %cst_19 = arith.constant 1.000000e+00 : f32
    %112 = vector.broadcast %cst_19 : f32 to vector<8x256xf32>
    %113 = arith.addf %112, %111 : vector<8x256xf32>
    %114 = arith.divf %112, %113 : vector<8x256xf32>
    %115 = vector.extract_strided_slice %114 {offsets = [0, 0], sizes = [8, 128], strides = [1, 1]} : vector<8x256xf32> to vector<8x128xf32>
    %116 = vector.extract_strided_slice %114 {offsets = [0, 128], sizes = [8, 128], strides = [1, 1]} : vector<8x256xf32> to vector<8x128xf32>
    %117 = vector.extract_strided_slice %106 {offsets = [0, 256], sizes = [8, 128], strides = [1, 1]} : vector<8x384xf32> to vector<8x128xf32>
    %118 = vector.extract_strided_slice %105 {offsets = [0, 256], sizes = [8, 128], strides = [1, 1]} : vector<8x384xf32> to vector<8x128xf32>
    %119 = vector.broadcast %4 : vector<1x128xf32> to vector<8x128xf32>
    %120 = arith.addf %118, %119 : vector<8x128xf32>
    %121 = arith.mulf %115, %120 : vector<8x128xf32>
    %122 = arith.addf %117, %121 : vector<8x128xf32>
    %123 = math.tanh %122 : vector<8x128xf32>
    %124 = arith.subf %103, %123 : vector<8x128xf32>
    %125 = arith.mulf %116, %124 : vector<8x128xf32>
    %126 = arith.addf %123, %125 : vector<8x128xf32>
    %127 = arith.truncf %126 : vector<8x128xf32> to vector<8x128xbf16>
    %cst_20 = arith.constant dense<0.000000e+00> : vector<8x384xf32>
    %128 = tpu.matmul %127, %1, %cst_20 {dimension_numbers = #tpu.dot_dimension_numbers<[1], [0], [0], [1], [0, 0, 1, 1], [], []>} : vector<8x128xbf16>, vector<128x384xbf16>, vector<8x384xf32> -> vector<8x384xf32>
    %129 = vector.extract_strided_slice %10 {offsets = [40, 0], sizes = [8, 384], strides = [1, 1]} : vector<64x384xf32> to vector<8x384xf32>
    %130 = vector.extract_strided_slice %129 {offsets = [0, 0], sizes = [8, 256], strides = [1, 1]} : vector<8x384xf32> to vector<8x256xf32>
    %131 = vector.extract_strided_slice %128 {offsets = [0, 0], sizes = [8, 256], strides = [1, 1]} : vector<8x384xf32> to vector<8x256xf32>
    %132 = arith.addf %130, %131 : vector<8x256xf32>
    %133 = arith.negf %132 : vector<8x256xf32>
    %134 = math.exp %133 : vector<8x256xf32>
    %cst_21 = arith.constant 1.000000e+00 : f32
    %135 = vector.broadcast %cst_21 : f32 to vector<8x256xf32>
    %136 = arith.addf %135, %134 : vector<8x256xf32>
    %137 = arith.divf %135, %136 : vector<8x256xf32>
    %138 = vector.extract_strided_slice %137 {offsets = [0, 0], sizes = [8, 128], strides = [1, 1]} : vector<8x256xf32> to vector<8x128xf32>
    %139 = vector.extract_strided_slice %137 {offsets = [0, 128], sizes = [8, 128], strides = [1, 1]} : vector<8x256xf32> to vector<8x128xf32>
    %140 = vector.extract_strided_slice %129 {offsets = [0, 256], sizes = [8, 128], strides = [1, 1]} : vector<8x384xf32> to vector<8x128xf32>
    %141 = vector.extract_strided_slice %128 {offsets = [0, 256], sizes = [8, 128], strides = [1, 1]} : vector<8x384xf32> to vector<8x128xf32>
    %142 = vector.broadcast %4 : vector<1x128xf32> to vector<8x128xf32>
    %143 = arith.addf %141, %142 : vector<8x128xf32>
    %144 = arith.mulf %138, %143 : vector<8x128xf32>
    %145 = arith.addf %140, %144 : vector<8x128xf32>
    %146 = math.tanh %145 : vector<8x128xf32>
    %147 = arith.subf %126, %146 : vector<8x128xf32>
    %148 = arith.mulf %139, %147 : vector<8x128xf32>
    %149 = arith.addf %146, %148 : vector<8x128xf32>
    %150 = arith.truncf %149 : vector<8x128xf32> to vector<8x128xbf16>
    %cst_22 = arith.constant dense<0.000000e+00> : vector<8x384xf32>
    %151 = tpu.matmul %150, %1, %cst_22 {dimension_numbers = #tpu.dot_dimension_numbers<[1], [0], [0], [1], [0, 0, 1, 1], [], []>} : vector<8x128xbf16>, vector<128x384xbf16>, vector<8x384xf32> -> vector<8x384xf32>
    %152 = vector.extract_strided_slice %10 {offsets = [48, 0], sizes = [8, 384], strides = [1, 1]} : vector<64x384xf32> to vector<8x384xf32>
    %153 = vector.extract_strided_slice %152 {offsets = [0, 0], sizes = [8, 256], strides = [1, 1]} : vector<8x384xf32> to vector<8x256xf32>
    %154 = vector.extract_strided_slice %151 {offsets = [0, 0], sizes = [8, 256], strides = [1, 1]} : vector<8x384xf32> to vector<8x256xf32>
    %155 = arith.addf %153, %154 : vector<8x256xf32>
    %156 = arith.negf %155 : vector<8x256xf32>
    %157 = math.exp %156 : vector<8x256xf32>
    %cst_23 = arith.constant 1.000000e+00 : f32
    %158 = vector.broadcast %cst_23 : f32 to vector<8x256xf32>
    %159 = arith.addf %158, %157 : vector<8x256xf32>
    %160 = arith.divf %158, %159 : vector<8x256xf32>
    %161 = vector.extract_strided_slice %160 {offsets = [0, 0], sizes = [8, 128], strides = [1, 1]} : vector<8x256xf32> to vector<8x128xf32>
    %162 = vector.extract_strided_slice %160 {offsets = [0, 128], sizes = [8, 128], strides = [1, 1]} : vector<8x256xf32> to vector<8x128xf32>
    %163 = vector.extract_strided_slice %152 {offsets = [0, 256], sizes = [8, 128], strides = [1, 1]} : vector<8x384xf32> to vector<8x128xf32>
    %164 = vector.extract_strided_slice %151 {offsets = [0, 256], sizes = [8, 128], strides = [1, 1]} : vector<8x384xf32> to vector<8x128xf32>
    %165 = vector.broadcast %4 : vector<1x128xf32> to vector<8x128xf32>
    %166 = arith.addf %164, %165 : vector<8x128xf32>
    %167 = arith.mulf %161, %166 : vector<8x128xf32>
    %168 = arith.addf %163, %167 : vector<8x128xf32>
    %169 = math.tanh %168 : vector<8x128xf32>
    %170 = arith.subf %149, %169 : vector<8x128xf32>
    %171 = arith.mulf %162, %170 : vector<8x128xf32>
    %172 = arith.addf %169, %171 : vector<8x128xf32>
    %173 = arith.truncf %172 : vector<8x128xf32> to vector<8x128xbf16>
    %cst_24 = arith.constant dense<0.000000e+00> : vector<8x384xf32>
    %174 = tpu.matmul %173, %1, %cst_24 {dimension_numbers = #tpu.dot_dimension_numbers<[1], [0], [0], [1], [0, 0, 1, 1], [], []>} : vector<8x128xbf16>, vector<128x384xbf16>, vector<8x384xf32> -> vector<8x384xf32>
    %175 = vector.extract_strided_slice %10 {offsets = [56, 0], sizes = [8, 384], strides = [1, 1]} : vector<64x384xf32> to vector<8x384xf32>
    %176 = vector.extract_strided_slice %175 {offsets = [0, 0], sizes = [8, 256], strides = [1, 1]} : vector<8x384xf32> to vector<8x256xf32>
    %177 = vector.extract_strided_slice %174 {offsets = [0, 0], sizes = [8, 256], strides = [1, 1]} : vector<8x384xf32> to vector<8x256xf32>
    %178 = arith.addf %176, %177 : vector<8x256xf32>
    %179 = arith.negf %178 : vector<8x256xf32>
    %180 = math.exp %179 : vector<8x256xf32>
    %cst_25 = arith.constant 1.000000e+00 : f32
    %181 = vector.broadcast %cst_25 : f32 to vector<8x256xf32>
    %182 = arith.addf %181, %180 : vector<8x256xf32>
    %183 = arith.divf %181, %182 : vector<8x256xf32>
    %184 = vector.extract_strided_slice %183 {offsets = [0, 0], sizes = [8, 128], strides = [1, 1]} : vector<8x256xf32> to vector<8x128xf32>
    %185 = vector.extract_strided_slice %183 {offsets = [0, 128], sizes = [8, 128], strides = [1, 1]} : vector<8x256xf32> to vector<8x128xf32>
    %186 = vector.extract_strided_slice %175 {offsets = [0, 256], sizes = [8, 128], strides = [1, 1]} : vector<8x384xf32> to vector<8x128xf32>
    %187 = vector.extract_strided_slice %174 {offsets = [0, 256], sizes = [8, 128], strides = [1, 1]} : vector<8x384xf32> to vector<8x128xf32>
    %188 = vector.broadcast %4 : vector<1x128xf32> to vector<8x128xf32>
    %189 = arith.addf %187, %188 : vector<8x128xf32>
    %190 = arith.mulf %184, %189 : vector<8x128xf32>
    %191 = arith.addf %186, %190 : vector<8x128xf32>
    %192 = math.tanh %191 : vector<8x128xf32>
    %193 = arith.subf %172, %192 : vector<8x128xf32>
    %194 = arith.mulf %185, %193 : vector<8x128xf32>
    %195 = arith.addf %192, %194 : vector<8x128xf32>
    %196 = arith.truncf %195 : vector<8x128xf32> to vector<8x128xbf16>
    %cst_26 = arith.constant dense<0.000000e+00> : vector<8x128xf32>
    %197 = tpu.matmul %196, %2, %cst_26 {dimension_numbers = #tpu.dot_dimension_numbers<[1], [0], [0], [1], [0, 0, 1, 1], [], []>} : vector<8x128xbf16>, vector<128x128xbf16>, vector<8x128xf32> -> vector<8x128xf32>
    %198 = vector.broadcast %5 : vector<1x128xf32> to vector<8x128xf32>
    %199 = arith.addf %197, %198 : vector<8x128xf32>
    %c0_27 = arith.constant 0 : index
    %c0_28 = arith.constant 0 : index
    %200 = vector.load %arg4[%c0_27, %c0_28] : memref<8x128xf32, #tpu.memory_space<vmem>>, vector<8x128xf32>
    tpu.vector_store %arg4[%c0_27, %c0_28], %199 {strides = array<i32>} : memref<8x128xf32, #tpu.memory_space<vmem>>, vector<8x128xf32>,
    return
  }
}

</mosaic_0001>

<bundles_post_ra>
// kernel: style_embedding_estimator.1
= control target key start
LH: loop header
LB: loop body
LE: loop exit
PB: predicated region body
PF: predicated region fallthrough
CT: control target
= control target key end

     0   :  { %9 = vsyncpa [#allocation3], 0  ;;  %s1876_s15 = smov [#allocation2]   ;;  %s2390_s0 = inlined_call_operand.vmem [shape: bf16[64,32], index: 0, kind: input, shape index: {}]   ;;  %s2391_s1 = inlined_call_operand.vmem [shape: bf16[32,384], index: 1, kind: input, shape index: {}]   ;;  %s2392_s2 = inlined_call_operand.hbm [shape: bf16[128,512], index: 2, kind: input, shape index: {}]   ;;  %s2393_s3 = inlined_call_operand.vmem [shape: f32[1,640], index: 3, kind: input, shape index: {}]   ;;  %s2394_s4 = inlined_call_operand.vmem [shape: f32[8,128], index: 4, kind: output, shape index: {}]  }
   0x1   :  { %s19_s16 = sshll.u32 %s1876_s15, 4  ;;  %s20_s16 = int_to_ptr.vmem [resolvable:$true] %s19_s16 }
   0x2   :  { %s1862_s17 = scalar_lea.vmem %s20_s16, 4096  ;;  %p1867_p1 = scmp.lt.s32.totalorder %s20_s16, %s20_s16 }
   0x3   :  { %p1863_p0 = scmp.ne.s32.totalorder %s20_s16, %s1862_s17  ;;  %p1868_p2 = scmp.lt.s32.totalorder %s1862_s17, %s1862_s17 }
   0x5   :  { %p1869_p3 = por %p1868_p2, %p1867_p1 }
   0x7   :  { %p1870_p4 = pnand %p1869_p3, %p1863_p0 }
   0x9   :  { %1873 = shalt.err (!%p1870_p4)
}
   0xa   :  { %s1877_s18 = smov 256   ;;  %s1878_s19 = smov 16  }
   0xb   :  { %25 = dma.hbm_to_vmem [thread:$0]  %s2392_s2, 4096, %s20_s16, [#allocation3], %s1877_s18, %s1877_s18, %s1878_s19  }
   0xc   :  { %1874 = dma.done.wait [#allocation3], 4096  }
   0xd   :  { %1875 = vsyncadd [#allocation3], 4294963200  ;;  %v2395_v0 = vmov 0   ;;  %v1697_v1 = vld [vmem:[%s2391_s1 + $0x1c] ss:$12 sps:$4 sm:$0xff]   ;;  %v1703_v5 = vld [vmem:[%s2390_s0] sm:$0xff]   ;;  %v84_v36 = vlaneseq }
   0xe   :  { %196 = vmatprep.mubr.bf16.mxu0 %v2395_v0  ;;  %v1699_v2 = vld [vmem:[%s2391_s1 + $0x18] ss:$12 sps:$4 sm:$0xff]   ;;  %176 = vmatprep.subr.bf16.mxu0 %v1697_v1  ;;  %v1702_v4 = vld [vmem:[%s2391_s1] ss:$12 sps:$4 sm:$0xff]   ;;  %vm151_vm0 = vcmask 261120   ;;  %v1717_v19 = vld [vmem:[%s2390_s0 + $0x10] sm:$0xff]  }
   0xf   :  { %v1700_v3 = vld [vmem:[%s2391_s1 + $0x4] ss:$12 sps:$4 sm:$0xff]   ;;  %177 = vmatpush1.bf16.msra.mxu0 %v1699_v2  ;;  %1503 = vmatprep.mubr.msk.bf16.mxu1 %vm151_vm0, %v1703_v5  ;;  %v1721_v11 = vld [vmem:[%s2391_s1 + $0x20] ss:$12 sps:$4 sm:$0xff]   ;;  %v1725_v14 = vld [vmem:[%s2391_s1 + $0x8] ss:$12 sps:$4 sm:$0xff]  }
  0x10   :  { %178 = vmatprep.subr.bf16.mxu0 %v1700_v3  ;;  %v1926_v6 = vld [vmem:[#allocation2 + $0xe4] ss:$16 sps:$4 sm:$0xff]   ;;  %v1929_v7 = vld [vmem:[#allocation2 + $0xe0] ss:$16 sps:$4 sm:$0xff]   ;;  %v1710_v12 = vld [vmem:[%s2390_s0 + $0x8] sm:$0xff]   ;;  %1499 = vmatprep.subr.bf16.mxu1 %v1721_v11  ;;  %v2397_v20 = vmov 0.0  }
  0x11   :  { %v1932_v8 = vld [vmem:[#allocation2 + $0xc4] ss:$16 sps:$4 sm:$0xff]   ;;  %v1936_v9 = vld [vmem:[#allocation2 + $0xc0] ss:$16 sps:$4 sm:$0xff]   ;;  %1500 = vmatpush3.bf16.msra.mxu1 %v1721_v11  ;;  %v1965_v18 = vld [vmem:[#allocation2 + $0xe8] ss:$16 sps:$4 sm:$0xff]  }
  0x12   :  { %v1940_v10 = vld [vmem:[#allocation2 + $0xa4] ss:$16 sps:$4 sm:$0xff]   ;;  %v1948_v13 = vld [vmem:[#allocation2 + $0xa0] ss:$16 sps:$4 sm:$0xff]   ;;  %1501 = vmatprep.subr.bf16.mxu1 %v1725_v14  ;;  %v1979_v23 = vld [vmem:[#allocation2 + $0xc8] ss:$16 sps:$4 sm:$0xff]  }
  0x13   :  { %179 = vmatpush1.bf16.msra.mxu0 %v1702_v4  ;;  %v1955_v15 = vld [vmem:[#allocation2 + $0x84] ss:$16 sps:$4 sm:$0xff]   ;;  %v1958_v16 = vld [vmem:[#allocation2 + $0x80] ss:$16 sps:$4 sm:$0xff]   ;;  %v1992_v26 = vld [vmem:[#allocation2 + $0xa8] ss:$16 sps:$4 sm:$0xff]  }
  0x14   :  { %430 = vmatprep.subr.bf16.mxu0 %v1926_v6  ;;  %v1962_v17 = vld [vmem:[#allocation2 + $0x64] ss:$16 sps:$4 sm:$0xff]   ;;  %v1971_v21 = vld [vmem:[#allocation2 + $0x60] ss:$16 sps:$4 sm:$0xff]   ;;  %v1726_v27 = vld [vmem:[%s2390_s0 + $0x18] sm:$0xff]   ;;  %vm1881_vm1 = vmmov 0  }
  0x15   :  { %1502 = vmatpush3.bf16.msra.mxu1 %v1725_v14  ;;  %v1974_v22 = vld [vmem:[#allocation2 + $0x44] ss:$16 sps:$4 sm:$0xff]   ;;  %v1985_v24 = vld [vmem:[#allocation2 + $0x40] ss:$16 sps:$4 sm:$0xff]   ;;  %v2006_v30 = vld [vmem:[#allocation2 + $0x88] ss:$16 sps:$4 sm:$0xff]  }
  0x16   :  { %1354 = vmatmul.mubr.msk.bf16.vlgmr.msra.gmra.mxu0 %vm151_vm0, %v1703_v5  ;;  %1511 = vmatprep.subr.bf16.mxu1 %v2397_v20  ;;  %v1989_v25 = vld [vmem:[#allocation2 + $0x24] ss:$16 sps:$4 sm:$0xff]   ;;  %v1999_v28 = vld [vmem:[#allocation2 + $0x20] ss:$16 sps:$4 sm:$0xff]   ;;  %v2018_v32 = vld [vmem:[#allocation2 + $0x68] ss:$16 sps:$4 sm:$0xff]  }
  0x17   :  { %431 = vmatpush1.bf16.msra.mxu0 %v1929_v7  ;;  %206 = vmatprep.mubr.bf16.mxu0 %v2395_v0  ;;  %v2003_v29 = vld [vmem:[#allocation2 + $0x4] ss:$16 sps:$4 sm:$0xff]   ;;  %v2013_v31 = vld [vmem:[#allocation2] ss:$16 sps:$4 sm:$0xff]   ;;  %v2023_v33 = vld [vmem:[#allocation2 + $0x48] ss:$16 sps:$4 sm:$0xff]  }
  0x18   :  { %432 = vmatprep.subr.bf16.mxu0 %v1932_v8  ;;  %1504 = vmatmul.mubr.msk.bf16.vlgmr.msra.gmra.mxu1 %vm151_vm0, %v1710_v12  ;;  %v2031_v34 = vld [vmem:[#allocation2 + $0x28] ss:$16 sps:$4 sm:$0xff]   ;;  %v85_v37 = vshrl.u32 %v84_v36, 7  ;;  %v64_v39 = vld [vmem:[%s2393_s3] sm:$0x7] }
  0x19   :  { %1512 = vmatpush3.bf16.msra.mxu1 %v1965_v18  ;;  %1507 = vmatprep.mubr.msk.bf16.mxu1 %vm151_vm0, %v1717_v19  ;;  %v2037_v35 = vld [vmem:[#allocation2 + $0x8] ss:$16 sps:$4 sm:$0xff]  }
  0x1a   :  { %1513 = vmatprep.subr.bf16.mxu1 %v2397_v20  ;;  %v86_v38 = vsub.s32 0, %v85_v37  ;;  %v90_v41 = vsub.s32 1, %v85_v37  ;;  %v94_v48 = vsub.s32 2, %v85_v37 }
  0x1b   :  { %433 = vmatpush1.bf16.msra.mxu0 %v1936_v9 }
  0x1c   :  { %434 = vmatprep.subr.bf16.mxu0 %v1940_v10  ;;  %v87_v43 = vrot.slane %v64_v39, %v86_v38  ;;  %v91_v45 = vrot.slane %v64_v39, %v90_v41  ;;  %v95_v53 = vrot.slane %v64_v39, %v94_v48 }
  0x1d   :  { %1514 = vmatpush3.bf16.msra.mxu1 %v1979_v23 }
  0x1e   :  { %1355 = vmatmul.mubr.msk.bf16.gmra.mxu0 %vm151_vm0, %v1710_v12  ;;  %1515 = vmatprep.subr.bf16.mxu1 %v2397_v20 }
  0x1f   :  { %435 = vmatpush1.bf16.msra.mxu0 %v1948_v13  ;;  %216 = vmatprep.mubr.bf16.mxu0 %v2395_v0 }
  0x20   :  { %436 = vmatprep.subr.bf16.mxu0 %v1955_v15  ;;  %1508 = vmatmul.mubr.msk.bf16.gmra.mxu1 %vm151_vm0, %v1726_v27 }
  0x21   :  { %1516 = vmatpush3.bf16.msra.mxu1 %v1992_v26  ;;  %1527 = vmatprep.mubr.msk.bf16.mxu1 %vm1881_vm1, %v2397_v20 }
  0x22   :  { %1517 = vmatprep.subr.bf16.mxu1 %v2397_v20 }
  0x23   :  { %437 = vmatpush1.bf16.msra.mxu0 %v1958_v16 }
  0x24   :  { %438 = vmatprep.subr.bf16.mxu0 %v1962_v17 }
  0x25   :  { %1518 = vmatpush3.bf16.msra.mxu1 %v2006_v30 }
  0x26   :  { %1356 = vmatmul.mubr.msk.bf16.gmra.mxu0 %vm151_vm0, %v1717_v19  ;;  %1519 = vmatprep.subr.bf16.mxu1 %v2397_v20 }
  0x27   :  { %439 = vmatpush1.bf16.msra.mxu0 %v1971_v21  ;;  %226 = vmatprep.mubr.bf16.mxu0 %v2395_v0 }
  0x28   :  { %440 = vmatprep.subr.bf16.mxu0 %v1974_v22 }
  0x29   :  { %1520 = vmatpush3.bf16.msra.mxu1 %v2018_v32 }
  0x2a   :  { %1521 = vmatprep.subr.bf16.mxu1 %v2397_v20 }
  0x2b   :  { %441 = vmatpush1.bf16.msra.mxu0 %v1985_v24 }
  0x2c   :  { %442 = vmatprep.subr.bf16.mxu0 %v1989_v25 }
  0x2d   :  { %1522 = vmatpush3.bf16.msra.mxu1 %v2023_v33 }
  0x2e   :  { %1357 = vmatmul.mubr.msk.bf16.gmra.mxu0 %vm151_vm0, %v1726_v27  ;;  %1523 = vmatprep.subr.bf16.mxu1 %v2397_v20 }
  0x2f   :  { %443 = vmatpush1.bf16.msra.mxu0 %v1999_v28  ;;  %462 = vmatprep.mubr.bf16.mxu0 %v2395_v0 }
  0x30   :  { %444 = vmatprep.subr.bf16.mxu0 %v2003_v29 }
  0x31   :  { %1524 = vmatpush3.bf16.msra.mxu1 %v2031_v34 }
  0x32   :  { %1525 = vmatprep.subr.bf16.mxu1 %v2397_v20 }
  0x33   :  { %445 = vmatpush1.bf16.msra.mxu0 %v2013_v31 }
  0x34   :  { %539 = vmatprep.subr.bf16.mxu0 %v1926_v6 }
  0x35   :  { %1526 = vmatpush3.bf16.msra.mxu1 %v2037_v35 }
  0x36   :  { %463 = vmatmul.mubr.bf16.vlgmr.msra.gmra.mxu0 %v2395_v0  ;;  %1531 = vmatprep.subr.bf16.mxu1 %v2397_v20 }
  0x37   :  { %540 = vmatpush1.bf16.msra.mxu0 %v1929_v7  ;;  %571 = vmatprep.mubr.bf16.mxu0 %v2395_v0 }
  0x38   :  { %541 = vmatprep.subr.bf16.mxu0 %v1932_v8  ;;  %1528 = vmatmul.mubr.bf16.vlgmr.msra.gmra.mxu1 %v2395_v0 }
  0x39   :  { %1532 = vmatpush3.bf16.msra.mxu1 %v1965_v18  ;;  %1547 = vmatprep.mubr.msk.bf16.mxu1 %vm1881_vm1, %v2397_v20 }
  0x3a   :  { %1533 = vmatprep.subr.bf16.mxu1 %v2397_v20 }
  0x3b   :  { %542 = vmatpush1.bf16.msra.mxu0 %v1936_v9 }
  0x3c   :  { %543 = vmatprep.subr.bf16.mxu0 %v1940_v10 }
  0x3d   :  { %1534 = vmatpush3.bf16.msra.mxu1 %v1979_v23 }
  0x3e   :  { %1535 = vmatprep.subr.bf16.mxu1 %v2397_v20 }
  0x3f   :  { %544 = vmatpush1.bf16.msra.mxu0 %v1948_v13 }
  0x40   :  { %545 = vmatprep.subr.bf16.mxu0 %v1955_v15 }
  0x41   :  { %1536 = vmatpush3.bf16.msra.mxu1 %v1992_v26 }
  0x42   :  { %1537 = vmatprep.subr.bf16.mxu1 %v2397_v20 }
  0x43   :  { %546 = vmatpush1.bf16.msra.mxu0 %v1958_v16 }
  0x44   :  { %547 = vmatprep.subr.bf16.mxu0 %v1962_v17 }
  0x45   :  { %1538 = vmatpush3.bf16.msra.mxu1 %v2006_v30 }
  0x46   :  { %1539 = vmatprep.subr.bf16.mxu1 %v2397_v20 }
  0x47   :  { %548 = vmatpush1.bf16.msra.mxu0 %v1971_v21 }
  0x48   :  { %549 = vmatprep.subr.bf16.mxu0 %v1974_v22 }
  0x49   :  { %1540 = vmatpush3.bf16.msra.mxu1 %v2018_v32 }
  0x4a   :  { %1541 = vmatprep.subr.bf16.mxu1 %v2397_v20 }
  0x4b   :  { %550 = vmatpush1.bf16.msra.mxu0 %v1985_v24 }
  0x4c   :  { %551 = vmatprep.subr.bf16.mxu0 %v1989_v25 }
  0x4d   :  { %1542 = vmatpush3.bf16.msra.mxu1 %v2023_v33 }
  0x4e   :  { %1543 = vmatprep.subr.bf16.mxu1 %v2397_v20 }
  0x4f   :  { %552 = vmatpush1.bf16.msra.mxu0 %v1999_v28 }
  0x50   :  { %553 = vmatprep.subr.bf16.mxu0 %v2003_v29 }
  0x51   :  { %1544 = vmatpush3.bf16.msra.mxu1 %v2031_v34 }
  0x52   :  { %1545 = vmatprep.subr.bf16.mxu1 %v2397_v20 }
  0x53   :  { %554 = vmatpush1.bf16.msra.mxu0 %v2013_v31 }
  0x54   :  { %642 = vmatprep.subr.bf16.mxu0 %v1926_v6 }
  0x55   :  { %1546 = vmatpush3.bf16.msra.mxu1 %v2037_v35 }
  0x56   :  { %1551 = vmatprep.subr.bf16.mxu1 %v2397_v20 }
  0xd6   :  { %v198_v40 = vpop.f32.mrf.mxu0 }
  0xd8   :  { %v200_v42 = vpop.f32.mrf.mxu0  ;;  %v1505_v57 = vpop.f32.mrf.mxu1 }
  0xd9   :  { %v2087_v59 = vadd.f32 %v1505_v57, %v95_v53  ;;  %v201_v0 = vadd.f32 %v200_v42, %v91_v45 }
  0xda   :  { %v202_v44 = vpop.f32.mrf.mxu0  ;;  %v271_v61 = vpop.f32.mrf.mxu1 }
  0xdb   :  { %v2077_v46 = vadd.f32 %v202_v44, %v87_v43  ;;  %v272_v42 = vadd.f32 %v271_v61, %v95_v53 }
  0xdc   :  { %v204_v47 = vpop.f32.mrf.mxu0  ;;  %v1506_v1 = vpop.f32.mrf.mxu1 }
  0xdd   :  { %v2079_v49 = vadd.f32 %v204_v47, %v91_v45  ;;  %v2093_v3 = vadd.f32 %v1506_v1, %v95_v53 }
  0xde   :  { %v208_v50 = vpop.f32.mrf.mxu0  ;;  %v274_v5 = vpop.f32.mrf.mxu1 }
  0xdf   :  { %v2081_v51 = vadd.f32 %v208_v50, %v87_v43  ;;  %v2097_v12 = vadd.f32 %v274_v5, %v95_v53 }
  0xe0   :  { %v210_v52 = vpop.f32.mrf.mxu0  ;;  %v1509_v19 = vpop.f32.mrf.mxu1 }
  0xe1   :  { %v2083_v54 = vadd.f32 %v210_v52, %v91_v45  ;;  %v2101_v36 = vadd.f32 %v1509_v19, %v95_v53 }
  0xe2   :  { %v212_v55 = vpop.f32.mrf.mxu0  ;;  %v287_v38 = vpop.f32.mrf.mxu1 }
  0xe3   :  { %v2085_v56 = vadd.f32 %v212_v55, %v87_v43  ;;  %2399 = vst [vmem:[#allocation5_spill] sm:$0xff] %v2101_v36  ;;  %v2105_v41 = vadd.f32 %v287_v38, %v95_v53 }
  0xe4   :  { %v214_v58 = vpop.f32.mrf.mxu0  ;;  %v1510_v47 = vpop.f32.mrf.mxu1 }
  0xe5   :  { %v2089_v60 = vadd.f32 %v214_v58, %v91_v45  ;;  %v2109_v50 = vadd.f32 %v1510_v47, %v95_v53 }
  0xe6   :  { %v218_v62 = vpop.f32.mrf.mxu0  ;;  %v290_v55 = vpop.f32.mrf.mxu1 }
  0xe7   :  { %v2091_v63 = vadd.f32 %v218_v62, %v87_v43  ;;  %2400 = vst [vmem:[#allocation6_spill] sm:$0xff] %v2109_v50  ;;  %v2113_v58 = vadd.f32 %v290_v55, %v95_v53  ;;  %v2404_v53 = vmov 0  }
  0xe8   :  { %v220_v2 = vpop.f32.mrf.mxu0 }
  0xe9   :  { %v2095_v4 = vadd.f32 %v220_v2, %v91_v45  ;;  %v199_v2 = vadd.f32 %v198_v40, %v87_v43  ;;  %v2122_v40 = vld [vmem:[%s2393_s3 + $0x3] ss:$0 sm:$0xff] }
  0xea   :  { %v222_v11 = vpop.f32.mrf.mxu0 }
  0xeb   :  { %v2099_v14 = vadd.f32 %v222_v11, %v87_v43 }
  0xec   :  { %v224_v27 = vpop.f32.mrf.mxu0 }
  0xed   :  { %v2103_v37 = vadd.f32 %v224_v27, %v91_v45 }
  0xee   :  { %v228_v39 = vpop.f32.mrf.mxu0 }
  0xef   :  { %v2107_v44 = vadd.f32 %v228_v39, %v87_v43 }
  0xf0   :  { %v230_v48 = vpop.f32.mrf.mxu0 }
  0xf1   :  { %v2111_v52 = vadd.f32 %v230_v48, %v91_v45 }
  0xf2   :  { %v232_v57 = vpop.f32.mrf.mxu0 }
  0xf3   :  { %2401 = vst [vmem:[#allocation7_spill] sm:$0xff] %v2111_v52  ;;  %v2115_v62 = vadd.f32 %v232_v57, %v87_v43 }
  0xf4   :  { %v234_v1 = vpop.f32.mrf.mxu0 }
  0xf5   :  { %2402 = vst [vmem:[#allocation8_spill] sm:$0xff] %v2115_v62  ;;  %v2117_v5 = vadd.f32 %v234_v1, %v91_v45 }
  0xf6   :  { %v464_v11 = vpop.f32.mrf.mxu0 }
  0xf7   :  { %v511_v19 = vadd.f32 %v464_v11, %v199_v2 }
  0xf8   :  { %v466_v27 = vpop.f32.mrf.mxu0  ;;  %v505_v20 = vpop.f32.mrf.mxu1 }
  0xf9   :  { %v1386_v38 = vmul.f32 -1.442695, %v511_v19  ;;  %v512_v48 = vadd.f32 %v466_v27, %v201_v0  ;;  %v531_v43 = vadd.f32 %v2122_v40, %v505_v20  ;;  %v2403_v20 = vmov 0.0  }
  0xfa   :  { %v468_v39 = vpop.f32.mrf.mxu0  ;;  %v1529_v50 = vpop.f32.mrf.mxu1 }
  0xfb   :  { %1757 = vpow2.f32 %v1386_v38  ;;  %v1387_v36 = vmul.f32 -1.442695, %v512_v48 }
  0xfc   :  { %v469_v47 = vpop.f32.mrf.mxu0  ;;  %v508_v55 = vpop.f32.mrf.mxu1 }
  0xfd   :  { %1759 = vpow2.f32 %v1387_v36 }
  0xfe   :  { %v1530_v62 = vpop.f32.mrf.mxu1 }
 0x108   :  { %v1758_v52 = vpop.eup %1757 }
 0x109   :  { %v519_v57 = vadd.f32 1.0, %v1758_v52 }
 0x10a   :  { %v1760_v1 = vpop.eup %1759 }
 0x10b   :  { %1761 = vrcp.f32 %v519_v57  ;;  %v520_v45 = vadd.f32 1.0, %v1760_v1 }
 0x118   :  { %v1762_v2 = vpop.eup %1761 }
 0x119   :  { %v532_v0 = vmul.f32 %v1762_v2, %v531_v43 }
 0x11b   :  { %v533_v50 = vadd.f32 %v532_v0, %v272_v42 }
 0x11d   :  { %1763 = vtanh.f32 %v533_v50 }
 0x11e   :  { %1765 = vrcp.f32 %v520_v45 }
 0x12a   :  { %v1764_v11 = vpop.eup %1763 }
 0x12b   :  { %v535_v52 = vsub.f32 0.0, %v1764_v11  ;;  %v1766_v62 = vpop.eup %1765 }
 0x12d   :  { %v536_v36 = vmul.f32 %v1766_v62, %v535_v52 }
 0x12f   :  { %v2125_v19 = vadd.f32 %v1764_v11, %v536_v36 }
 0x131   :  { %v538_v27 = vpack.c.bf16 %v2125_v19, %v2125_v19 }
 0x133   :  { %572 = vmatmul.mubr.bf16.vlgmr.msra.gmra.mxu0 %v538_v27  ;;  %1548 = vmatmul.mubr.bf16.vlgmr.msra.gmra.mxu1 %v538_v27 }
 0x134   :  { %643 = vmatpush1.bf16.msra.mxu0 %v1929_v7  ;;  %1552 = vmatpush3.bf16.msra.mxu1 %v1965_v18 }
 0x135   :  { %644 = vmatprep.subr.bf16.mxu0 %v1932_v8  ;;  %1553 = vmatprep.subr.bf16.mxu1 %v2403_v20 }
 0x136   :  { %674 = vmatprep.mubr.bf16.mxu0 %v2404_v53  ;;  %1567 = vmatprep.mubr.msk.bf16.mxu1 %vm1881_vm1, %v2403_v20 }
 0x138   :  { %645 = vmatpush1.bf16.msra.mxu0 %v1936_v9  ;;  %1554 = vmatpush3.bf16.msra.mxu1 %v1979_v23 }
 0x139   :  { %646 = vmatprep.subr.bf16.mxu0 %v1940_v10  ;;  %1555 = vmatprep.subr.bf16.mxu1 %v2403_v20 }
 0x13c   :  { %647 = vmatpush1.bf16.msra.mxu0 %v1948_v13  ;;  %1556 = vmatpush3.bf16.msra.mxu1 %v1992_v26 }
 0x13d   :  { %648 = vmatprep.subr.bf16.mxu0 %v1955_v15  ;;  %1557 = vmatprep.subr.bf16.mxu1 %v2403_v20 }
 0x140   :  { %649 = vmatpush1.bf16.msra.mxu0 %v1958_v16  ;;  %1558 = vmatpush3.bf16.msra.mxu1 %v2006_v30 }
 0x141   :  { %650 = vmatprep.subr.bf16.mxu0 %v1962_v17  ;;  %1559 = vmatprep.subr.bf16.mxu1 %v2403_v20 }
 0x144   :  { %651 = vmatpush1.bf16.msra.mxu0 %v1971_v21  ;;  %1560 = vmatpush3.bf16.msra.mxu1 %v2018_v32 }
 0x145   :  { %652 = vmatprep.subr.bf16.mxu0 %v1974_v22  ;;  %1561 = vmatprep.subr.bf16.mxu1 %v2403_v20 }
 0x148   :  { %653 = vmatpush1.bf16.msra.mxu0 %v1985_v24  ;;  %1562 = vmatpush3.bf16.msra.mxu1 %v2023_v33 }
 0x149   :  { %654 = vmatprep.subr.bf16.mxu0 %v1989_v25  ;;  %1563 = vmatprep.subr.bf16.mxu1 %v2403_v20 }
 0x14c   :  { %655 = vmatpush1.bf16.msra.mxu0 %v1999_v28  ;;  %1564 = vmatpush3.bf16.msra.mxu1 %v2031_v34 }
 0x14d   :  { %656 = vmatprep.subr.bf16.mxu0 %v2003_v29  ;;  %1565 = vmatprep.subr.bf16.mxu1 %v2403_v20 }
 0x150   :  { %657 = vmatpush1.bf16.msra.mxu0 %v2013_v31  ;;  %1566 = vmatpush3.bf16.msra.mxu1 %v2037_v35 }
 0x151   :  { %745 = vmatprep.subr.bf16.mxu0 %v1926_v6  ;;  %1571 = vmatprep.subr.bf16.mxu1 %v2403_v20 }
 0x1f3   :  { %v573_v61 = vpop.f32.mrf.mxu0  ;;  %v614_v38 = vpop.f32.mrf.mxu1 }
 0x1f4   :  { %v620_v39 = vadd.f32 %v573_v61, %v2077_v46  ;;  %v634_v52 = vadd.f32 %v2122_v40, %v614_v38 }
 0x1f5   :  { %v575_v47 = vpop.f32.mrf.mxu0  ;;  %v1549_v48 = vpop.f32.mrf.mxu1 }
 0x1f6   :  { %v1389_v55 = vmul.f32 -1.442695, %v620_v39  ;;  %v621_v42 = vadd.f32 %v575_v47, %v2079_v49 }
 0x1f7   :  { %v577_v57 = vpop.f32.mrf.mxu0  ;;  %v617_v43 = vpop.f32.mrf.mxu1 }
 0x1f8   :  { %1767 = vpow2.f32 %v1389_v55  ;;  %v1390_v0 = vmul.f32 -1.442695, %v621_v42 }
 0x1f9   :  { %v578_v1 = vpop.f32.mrf.mxu0  ;;  %v1550_v2 = vpop.f32.mrf.mxu1 }
 0x1fa   :  { %1769 = vpow2.f32 %v1390_v0 }
 0x205   :  { %v1768_v45 = vpop.eup %1767 }
 0x206   :  { %v628_v50 = vadd.f32 1.0, %v1768_v45 }
 0x207   :  { %v1770_v11 = vpop.eup %1769 }
 0x208   :  { %1771 = vrcp.f32 %v628_v50  ;;  %v629_v27 = vadd.f32 1.0, %v1770_v11 }
 0x215   :  { %v1772_v62 = vpop.eup %1771 }
 0x216   :  { %v635_v46 = vmul.f32 %v1772_v62, %v634_v52 }
 0x218   :  { %v636_v36 = vadd.f32 %v635_v46, %v2097_v12 }
 0x21a   :  { %1773 = vtanh.f32 %v636_v36 }
 0x21b   :  { %1775 = vrcp.f32 %v629_v27 }
 0x227   :  { %v1774_v61 = vpop.eup %1773 }
 0x228   :  { %v638_v39 = vsub.f32 %v2125_v19, %v1774_v61  ;;  %v1776_v48 = vpop.eup %1775 }
 0x22a   :  { %v639_v49 = vmul.f32 %v1776_v48, %v638_v39 }
 0x22c   :  { %v2169_v47 = vadd.f32 %v1774_v61, %v639_v49 }
 0x22e   :  { %v641_v55 = vpack.c.bf16 %v2169_v47, %v2169_v47 }
 0x230   :  { %675 = vmatmul.mubr.bf16.vlgmr.msra.gmra.mxu0 %v641_v55  ;;  %1568 = vmatmul.mubr.bf16.vlgmr.msra.gmra.mxu1 %v641_v55 }
 0x231   :  { %746 = vmatpush1.bf16.msra.mxu0 %v1929_v7  ;;  %1572 = vmatpush3.bf16.msra.mxu1 %v1965_v18 }
 0x232   :  { %747 = vmatprep.subr.bf16.mxu0 %v1932_v8  ;;  %1573 = vmatprep.subr.bf16.mxu1 %v2403_v20 }
 0x233   :  { %777 = vmatprep.mubr.bf16.mxu0 %v2404_v53  ;;  %1587 = vmatprep.mubr.msk.bf16.mxu1 %vm1881_vm1, %v2403_v20 }
 0x235   :  { %748 = vmatpush1.bf16.msra.mxu0 %v1936_v9  ;;  %1574 = vmatpush3.bf16.msra.mxu1 %v1979_v23 }
 0x236   :  { %749 = vmatprep.subr.bf16.mxu0 %v1940_v10  ;;  %1575 = vmatprep.subr.bf16.mxu1 %v2403_v20 }
 0x239   :  { %750 = vmatpush1.bf16.msra.mxu0 %v1948_v13  ;;  %1576 = vmatpush3.bf16.msra.mxu1 %v1992_v26 }
 0x23a   :  { %751 = vmatprep.subr.bf16.mxu0 %v1955_v15  ;;  %1577 = vmatprep.subr.bf16.mxu1 %v2403_v20 }
 0x23d   :  { %752 = vmatpush1.bf16.msra.mxu0 %v1958_v16  ;;  %1578 = vmatpush3.bf16.msra.mxu1 %v2006_v30 }
 0x23e   :  { %753 = vmatprep.subr.bf16.mxu0 %v1962_v17  ;;  %1579 = vmatprep.subr.bf16.mxu1 %v2403_v20 }
 0x241   :  { %754 = vmatpush1.bf16.msra.mxu0 %v1971_v21  ;;  %1580 = vmatpush3.bf16.msra.mxu1 %v2018_v32 }
 0x242   :  { %755 = vmatprep.subr.bf16.mxu0 %v1974_v22  ;;  %1581 = vmatprep.subr.bf16.mxu1 %v2403_v20 }
 0x245   :  { %756 = vmatpush1.bf16.msra.mxu0 %v1985_v24  ;;  %1582 = vmatpush3.bf16.msra.mxu1 %v2023_v33 }
 0x246   :  { %757 = vmatprep.subr.bf16.mxu0 %v1989_v25  ;;  %1583 = vmatprep.subr.bf16.mxu1 %v2403_v20 }
 0x249   :  { %758 = vmatpush1.bf16.msra.mxu0 %v1999_v28  ;;  %1584 = vmatpush3.bf16.msra.mxu1 %v2031_v34 }
 0x24a   :  { %759 = vmatprep.subr.bf16.mxu0 %v2003_v29  ;;  %1585 = vmatprep.subr.bf16.mxu1 %v2403_v20 }
 0x24d   :  { %760 = vmatpush1.bf16.msra.mxu0 %v2013_v31  ;;  %1586 = vmatpush3.bf16.msra.mxu1 %v2037_v35 }
 0x24e   :  { %848 = vmatprep.subr.bf16.mxu0 %v1926_v6  ;;  %1591 = vmatprep.subr.bf16.mxu1 %v2403_v20 }
 0x2f0   :  { %v676_v12 = vpop.f32.mrf.mxu0  ;;  %v717_v19 = vpop.f32.mrf.mxu1 }
 0x2f1   :  { %v723_v38 = vadd.f32 %v676_v12, %v2081_v51  ;;  %v737_v36 = vadd.f32 %v2122_v40, %v717_v19 }
 0x2f2   :  { %v678_v57 = vpop.f32.mrf.mxu0  ;;  %v1569_v43 = vpop.f32.mrf.mxu1 }
 0x2f3   :  { %v1391_v1 = vmul.f32 -1.442695, %v723_v38  ;;  %v724_v50 = vadd.f32 %v678_v57, %v2083_v54 }
 0x2f4   :  { %v680_v2 = vpop.f32.mrf.mxu0  ;;  %v720_v42 = vpop.f32.mrf.mxu1 }
 0x2f5   :  { %1777 = vpow2.f32 %v1391_v1  ;;  %v1392_v11 = vmul.f32 -1.442695, %v724_v50 }
 0x2f6   :  { %v681_v0 = vpop.f32.mrf.mxu0  ;;  %v1570_v45 = vpop.f32.mrf.mxu1 }
 0x2f7   :  { %1779 = vpow2.f32 %v1392_v11 }
 0x302   :  { %v1778_v52 = vpop.eup %1777 }
 0x303   :  { %v731_v62 = vadd.f32 1.0, %v1778_v52 }
 0x304   :  { %v1780_v46 = vpop.eup %1779 }
 0x305   :  { %1781 = vrcp.f32 %v731_v62  ;;  %v732_v39 = vadd.f32 1.0, %v1780_v46 }
 0x312   :  { %v1782_v27 = vpop.eup %1781 }
 0x313   :  { %v738_v51 = vmul.f32 %v1782_v27, %v737_v36 }
 0x315   :  { %v739_v61 = vadd.f32 %v738_v51, %v2087_v59 }
 0x317   :  { %1783 = vtanh.f32 %v739_v61 }
 0x318   :  { %1785 = vrcp.f32 %v732_v39 }
 0x324   :  { %v1784_v48 = vpop.eup %1783 }
 0x325   :  { %v741_v49 = vsub.f32 %v2169_v47, %v1784_v48  ;;  %v1786_v55 = vpop.eup %1785 }
 0x327   :  { %v742_v54 = vmul.f32 %v1786_v55, %v741_v49 }
 0x329   :  { %v2213_v12 = vadd.f32 %v1784_v48, %v742_v54 }
 0x32b   :  { %v744_v38 = vpack.c.bf16 %v2213_v12, %v2213_v12 }
 0x32d   :  { %778 = vmatmul.mubr.bf16.vlgmr.msra.gmra.mxu0 %v744_v38  ;;  %1588 = vmatmul.mubr.bf16.vlgmr.msra.gmra.mxu1 %v744_v38 }
 0x32e   :  { %849 = vmatpush1.bf16.msra.mxu0 %v1929_v7  ;;  %1592 = vmatpush3.bf16.msra.mxu1 %v1965_v18 }
 0x32f   :  { %850 = vmatprep.subr.bf16.mxu0 %v1932_v8  ;;  %1593 = vmatprep.subr.bf16.mxu1 %v2403_v20 }
 0x330   :  { %880 = vmatprep.mubr.bf16.mxu0 %v2404_v53  ;;  %1607 = vmatprep.mubr.msk.bf16.mxu1 %vm1881_vm1, %v2403_v20 }
 0x332   :  { %851 = vmatpush1.bf16.msra.mxu0 %v1936_v9  ;;  %1594 = vmatpush3.bf16.msra.mxu1 %v1979_v23 }
 0x333   :  { %852 = vmatprep.subr.bf16.mxu0 %v1940_v10  ;;  %1595 = vmatprep.subr.bf16.mxu1 %v2403_v20 }
 0x336   :  { %853 = vmatpush1.bf16.msra.mxu0 %v1948_v13  ;;  %1596 = vmatpush3.bf16.msra.mxu1 %v1992_v26 }
 0x337   :  { %854 = vmatprep.subr.bf16.mxu0 %v1955_v15  ;;  %1597 = vmatprep.subr.bf16.mxu1 %v2403_v20 }
 0x33a   :  { %855 = vmatpush1.bf16.msra.mxu0 %v1958_v16  ;;  %1598 = vmatpush3.bf16.msra.mxu1 %v2006_v30 }
 0x33b   :  { %856 = vmatprep.subr.bf16.mxu0 %v1962_v17  ;;  %1599 = vmatprep.subr.bf16.mxu1 %v2403_v20 }
 0x33e   :  { %857 = vmatpush1.bf16.msra.mxu0 %v1971_v21  ;;  %1600 = vmatpush3.bf16.msra.mxu1 %v2018_v32 }
 0x33f   :  { %858 = vmatprep.subr.bf16.mxu0 %v1974_v22  ;;  %1601 = vmatprep.subr.bf16.mxu1 %v2403_v20 }
 0x342   :  { %859 = vmatpush1.bf16.msra.mxu0 %v1985_v24  ;;  %1602 = vmatpush3.bf16.msra.mxu1 %v2023_v33 }
 0x343   :  { %860 = vmatprep.subr.bf16.mxu0 %v1989_v25  ;;  %1603 = vmatprep.subr.bf16.mxu1 %v2403_v20 }
 0x346   :  { %861 = vmatpush1.bf16.msra.mxu0 %v1999_v28  ;;  %1604 = vmatpush3.bf16.msra.mxu1 %v2031_v34 }
 0x347   :  { %862 = vmatprep.subr.bf16.mxu0 %v2003_v29  ;;  %1605 = vmatprep.subr.bf16.mxu1 %v2403_v20 }
 0x34a   :  { %863 = vmatpush1.bf16.msra.mxu0 %v2013_v31  ;;  %1606 = vmatpush3.bf16.msra.mxu1 %v2037_v35 }
 0x34b   :  { %951 = vmatprep.subr.bf16.mxu0 %v1926_v6  ;;  %1611 = vmatprep.subr.bf16.mxu1 %v2403_v20 }
 0x3ed   :  { %v779_v59 = vpop.f32.mrf.mxu0  ;;  %v820_v47 = vpop.f32.mrf.mxu1 }
 0x3ee   :  { %v826_v19 = vadd.f32 %v779_v59, %v2085_v56  ;;  %v840_v36 = vadd.f32 %v2122_v40, %v820_v47 }
 0x3ef   :  { %v781_v57 = vpop.f32.mrf.mxu0  ;;  %v1589_v43 = vpop.f32.mrf.mxu1 }
 0x3f0   :  { %v1393_v1 = vmul.f32 -1.442695, %v826_v19  ;;  %v827_v50 = vadd.f32 %v781_v57, %v2089_v60 }
 0x3f1   :  { %v783_v2 = vpop.f32.mrf.mxu0  ;;  %v823_v42 = vpop.f32.mrf.mxu1 }
 0x3f2   :  { %1787 = vpow2.f32 %v1393_v1  ;;  %v1394_v11 = vmul.f32 -1.442695, %v827_v50 }
 0x3f3   :  { %v784_v0 = vpop.f32.mrf.mxu0  ;;  %v1590_v45 = vpop.f32.mrf.mxu1 }
 0x3f4   :  { %1789 = vpow2.f32 %v1394_v11 }
 0x3ff   :  { %v1788_v52 = vpop.eup %1787 }
 0x400   :  { %v834_v62 = vadd.f32 1.0, %v1788_v52 }
 0x401   :  { %v1790_v46 = vpop.eup %1789 }
 0x402   :  { %1791 = vrcp.f32 %v834_v62  ;;  %v835_v61 = vadd.f32 1.0, %v1790_v46 }
 0x40f   :  { %v1792_v27 = vpop.eup %1791 }
 0x410   :  { %v841_v56 = vmul.f32 %v1792_v27, %v840_v36 }
 0x412   :  { %v842_v51 = vadd.f32 %v841_v56, %v2093_v3 }
 0x414   :  { %1793 = vtanh.f32 %v842_v51 }
 0x415   :  { %1795 = vrcp.f32 %v835_v61 }
 0x421   :  { %v1794_v39 = vpop.eup %1793 }
 0x422   :  { %v844_v48 = vsub.f32 %v2213_v12, %v1794_v39  ;;  %v1796_v49 = vpop.eup %1795 }
 0x424   :  { %v845_v60 = vmul.f32 %v1796_v49, %v844_v48 }
 0x426   :  { %v2257_v55 = vadd.f32 %v1794_v39, %v845_v60 }
 0x428   :  { %v847_v54 = vpack.c.bf16 %v2257_v55, %v2257_v55 }
 0x42a   :  { %881 = vmatmul.mubr.bf16.vlgmr.msra.gmra.mxu0 %v847_v54  ;;  %1608 = vmatmul.mubr.bf16.vlgmr.msra.gmra.mxu1 %v847_v54 }
 0x42b   :  { %952 = vmatpush1.bf16.msra.mxu0 %v1929_v7  ;;  %1612 = vmatpush3.bf16.msra.mxu1 %v1965_v18 }
 0x42c   :  { %953 = vmatprep.subr.bf16.mxu0 %v1932_v8  ;;  %1613 = vmatprep.subr.bf16.mxu1 %v2403_v20 }
 0x42d   :  { %983 = vmatprep.mubr.bf16.mxu0 %v2404_v53  ;;  %1627 = vmatprep.mubr.msk.bf16.mxu1 %vm1881_vm1, %v2403_v20 }
 0x42f   :  { %954 = vmatpush1.bf16.msra.mxu0 %v1936_v9  ;;  %1614 = vmatpush3.bf16.msra.mxu1 %v1979_v23 }
 0x430   :  { %955 = vmatprep.subr.bf16.mxu0 %v1940_v10  ;;  %1615 = vmatprep.subr.bf16.mxu1 %v2403_v20 }
 0x433   :  { %956 = vmatpush1.bf16.msra.mxu0 %v1948_v13  ;;  %1616 = vmatpush3.bf16.msra.mxu1 %v1992_v26 }
 0x434   :  { %957 = vmatprep.subr.bf16.mxu0 %v1955_v15  ;;  %1617 = vmatprep.subr.bf16.mxu1 %v2403_v20 }
 0x437   :  { %958 = vmatpush1.bf16.msra.mxu0 %v1958_v16  ;;  %1618 = vmatpush3.bf16.msra.mxu1 %v2006_v30 }
 0x438   :  { %959 = vmatprep.subr.bf16.mxu0 %v1962_v17  ;;  %1619 = vmatprep.subr.bf16.mxu1 %v2403_v20 }
 0x43b   :  { %960 = vmatpush1.bf16.msra.mxu0 %v1971_v21  ;;  %1620 = vmatpush3.bf16.msra.mxu1 %v2018_v32 }
 0x43c   :  { %961 = vmatprep.subr.bf16.mxu0 %v1974_v22  ;;  %1621 = vmatprep.subr.bf16.mxu1 %v2403_v20 }
 0x43f   :  { %962 = vmatpush1.bf16.msra.mxu0 %v1985_v24  ;;  %1622 = vmatpush3.bf16.msra.mxu1 %v2023_v33 }
 0x440   :  { %963 = vmatprep.subr.bf16.mxu0 %v1989_v25  ;;  %1623 = vmatprep.subr.bf16.mxu1 %v2403_v20 }
 0x443   :  { %964 = vmatpush1.bf16.msra.mxu0 %v1999_v28  ;;  %1624 = vmatpush3.bf16.msra.mxu1 %v2031_v34 }
 0x444   :  { %965 = vmatprep.subr.bf16.mxu0 %v2003_v29  ;;  %1625 = vmatprep.subr.bf16.mxu1 %v2403_v20 }
 0x447   :  { %966 = vmatpush1.bf16.msra.mxu0 %v2013_v31  ;;  %1626 = vmatpush3.bf16.msra.mxu1 %v2037_v35 }
 0x448   :  { %1054 = vmatprep.subr.bf16.mxu0 %v1926_v6  ;;  %1631 = vmatprep.subr.bf16.mxu1 %v2403_v20 }
 0x4ea   :  { %v882_v3 = vpop.f32.mrf.mxu0  ;;  %v923_v12 = vpop.f32.mrf.mxu1 }
 0x4eb   :  { %v929_v38 = vadd.f32 %v882_v3, %v2091_v63  ;;  %v943_v11 = vadd.f32 %v2122_v40, %v923_v12 }
 0x4ec   :  { %v884_v59 = vpop.f32.mrf.mxu0  ;;  %v1609_v47 = vpop.f32.mrf.mxu1 }
 0x4ed   :  { %v1395_v19 = vmul.f32 -1.442695, %v929_v38  ;;  %v930_v42 = vadd.f32 %v884_v59, %v2095_v4  ;;  %v1838_v38 = vld [vmem:[#allocation2 + $0xe0] ss:$16 sps:$4 sm:$0xff]   ;;  %v1839_v59 = vld [vmem:[#allocation2 + $0xe8] ss:$16 sps:$4 sm:$0xff]  }
 0x4ee   :  { %v886_v57 = vpop.f32.mrf.mxu0  ;;  %v926_v43 = vpop.f32.mrf.mxu1  ;;  %v1841_v47 = vld [vmem:[#allocation2 + $0xc0] ss:$16 sps:$4 sm:$0xff]  }
 0x4ef   :  { %1797 = vpow2.f32 %v1395_v19  ;;  %v1396_v0 = vmul.f32 -1.442695, %v930_v42  ;;  %v1842_v19 = vld [vmem:[#allocation2 + $0xc8] ss:$16 sps:$4 sm:$0xff]   ;;  %v1843_v57 = vld [vmem:[#allocation2 + $0xa4] ss:$16 sps:$4 sm:$0xff]  }
 0x4f0   :  { %v887_v1 = vpop.f32.mrf.mxu0  ;;  %v1610_v2 = vpop.f32.mrf.mxu1  ;;  %v1844_v43 = vld [vmem:[#allocation2 + $0xa0] ss:$16 sps:$4 sm:$0xff]  }
 0x4f1   :  { %1799 = vpow2.f32 %v1396_v0  ;;  %v1845_v1 = vld [vmem:[#allocation2 + $0x84] ss:$16 sps:$4 sm:$0xff]   ;;  %v1848_v42 = vld [vmem:[#allocation2 + $0x60] ss:$16 sps:$4 sm:$0xff]  }
 0x4f2   :  { %v1847_v2 = vld [vmem:[#allocation2 + $0x64] ss:$16 sps:$4 sm:$0xff]  }
 0x4f3   :  { %v1849_v0 = vld [vmem:[#allocation2 + $0x44] ss:$16 sps:$4 sm:$0xff]  }
 0x4fc   :  { %v1798_v45 = vpop.eup %1797 }
 0x4fd   :  { %v937_v50 = vadd.f32 1.0, %v1798_v45  ;;  %v1851_v45 = vld [vmem:[#allocation2 + $0x24] ss:$16 sps:$4 sm:$0xff]  }
 0x4fe   :  { %v1800_v6 = vpop.eup %1799 }
 0x4ff   :  { %1801 = vrcp.f32 %v937_v50  ;;  %v938_v46 = vadd.f32 1.0, %v1800_v6  ;;  %v1853_v50 = vld [vmem:[#allocation2 + $0x4] ss:$16 sps:$4 sm:$0xff]  }
 0x50c   :  { %v1802_v52 = vpop.eup %1801 }
 0x50d   :  { %v944_v63 = vmul.f32 %v1802_v52, %v943_v11 }
 0x50f   :  { %v945_v62 = vadd.f32 %v944_v63, %v2105_v41 }
 0x511   :  { %1803 = vtanh.f32 %v945_v62 }
 0x512   :  { %1805 = vrcp.f32 %v938_v46 }
 0x51e   :  { %v1804_v36 = vpop.eup %1803 }
 0x51f   :  { %v947_v27 = vsub.f32 %v2257_v55, %v1804_v36  ;;  %v1806_v56 = vpop.eup %1805 }
 0x521   :  { %v948_v4 = vmul.f32 %v1806_v56, %v947_v27  ;;  %v2405_v27 = vld [vmem:[#allocation7_spill] sm:$0xff] }
 0x523   :  { %v2301_v51 = vadd.f32 %v1804_v36, %v948_v4 }
 0x525   :  { %v950_v61 = vpack.c.bf16 %v2301_v51, %v2301_v51 }
 0x527   :  { %984 = vmatmul.mubr.bf16.vlgmr.msra.gmra.mxu0 %v950_v61  ;;  %1628 = vmatmul.mubr.bf16.vlgmr.msra.gmra.mxu1 %v950_v61 }
 0x528   :  { %1055 = vmatpush1.bf16.msra.mxu0 %v1929_v7  ;;  %1632 = vmatpush3.bf16.msra.mxu1 %v1965_v18  ;;  %v1837_v7 = vld [vmem:[#allocation2 + $0xe4] ss:$16 sps:$4 sm:$0xff]  }
 0x529   :  { %1056 = vmatprep.subr.bf16.mxu0 %v1932_v8  ;;  %1633 = vmatprep.subr.bf16.mxu1 %v2403_v20 }
 0x52a   :  { %1086 = vmatprep.mubr.bf16.mxu0 %v2404_v53  ;;  %1647 = vmatprep.mubr.msk.bf16.mxu1 %vm1881_vm1, %v2403_v20 }
 0x52c   :  { %1057 = vmatpush1.bf16.msra.mxu0 %v1936_v9  ;;  %1634 = vmatpush3.bf16.msra.mxu1 %v1979_v23 }
 0x52d   :  { %1058 = vmatprep.subr.bf16.mxu0 %v1940_v10  ;;  %1635 = vmatprep.subr.bf16.mxu1 %v2403_v20 }
 0x530   :  { %1059 = vmatpush1.bf16.msra.mxu0 %v1948_v13  ;;  %1636 = vmatpush3.bf16.msra.mxu1 %v1992_v26 }
 0x531   :  { %1060 = vmatprep.subr.bf16.mxu0 %v1955_v15  ;;  %1637 = vmatprep.subr.bf16.mxu1 %v2403_v20 }
 0x534   :  { %1061 = vmatpush1.bf16.msra.mxu0 %v1958_v16  ;;  %1638 = vmatpush3.bf16.msra.mxu1 %v2006_v30 }
 0x535   :  { %1062 = vmatprep.subr.bf16.mxu0 %v1962_v17  ;;  %1639 = vmatprep.subr.bf16.mxu1 %v2403_v20 }
 0x538   :  { %1063 = vmatpush1.bf16.msra.mxu0 %v1971_v21  ;;  %1640 = vmatpush3.bf16.msra.mxu1 %v2018_v32 }
 0x539   :  { %1064 = vmatprep.subr.bf16.mxu0 %v1974_v22  ;;  %1641 = vmatprep.subr.bf16.mxu1 %v2403_v20 }
 0x53c   :  { %1065 = vmatpush1.bf16.msra.mxu0 %v1985_v24  ;;  %1642 = vmatpush3.bf16.msra.mxu1 %v2023_v33 }
 0x53d   :  { %1066 = vmatprep.subr.bf16.mxu0 %v1989_v25  ;;  %1643 = vmatprep.subr.bf16.mxu1 %v2403_v20 }
 0x540   :  { %1067 = vmatpush1.bf16.msra.mxu0 %v1999_v28  ;;  %1644 = vmatpush3.bf16.msra.mxu1 %v2031_v34 }
 0x541   :  { %1068 = vmatprep.subr.bf16.mxu0 %v2003_v29  ;;  %1645 = vmatprep.subr.bf16.mxu1 %v2403_v20 }
 0x544   :  { %1069 = vmatpush1.bf16.msra.mxu0 %v2013_v31  ;;  %1646 = vmatpush3.bf16.msra.mxu1 %v2037_v35 }
 0x545   :  { %1157 = vmatprep.subr.bf16.mxu0 %v1837_v7  ;;  %1651 = vmatprep.subr.bf16.mxu1 %v2403_v20 }
 0x5e7   :  { %v985_v8 = vpop.f32.mrf.mxu0  ;;  %v1026_v9 = vpop.f32.mrf.mxu1 }
 0x5e8   :  { %v1032_v10 = vadd.f32 %v985_v8, %v2099_v14  ;;  %v1046_v41 = vadd.f32 %v2122_v40, %v1026_v9  ;;  %v2406_v8 = vld [vmem:[#allocation5_spill] sm:$0xff] }
 0x5e9   :  { %v987_v13 = vpop.f32.mrf.mxu0  ;;  %v1629_v15 = vpop.f32.mrf.mxu1 }
 0x5ea   :  { %v1397_v16 = vmul.f32 -1.442695, %v1032_v10  ;;  %v1033_v23 = vadd.f32 %v987_v13, %v2103_v37 }
 0x5eb   :  { %v989_v17 = vpop.f32.mrf.mxu0  ;;  %v1029_v18 = vpop.f32.mrf.mxu1 }
 0x5ec   :  { %1807 = vpow2.f32 %v1397_v16  ;;  %v1398_v24 = vmul.f32 -1.442695, %v1033_v23  ;;  %v1750_v23 = vld [vmem:[#allocation2 + $0xcc] ss:$16 sps:$4 sm:$0xff]  }
 0x5ed   :  { %v990_v21 = vpop.f32.mrf.mxu0  ;;  %v1630_v22 = vpop.f32.mrf.mxu1 }
 0x5ee   :  { %1809 = vpow2.f32 %v1398_v24  ;;  %v1749_v22 = vld [vmem:[#allocation2 + $0xec] ss:$16 sps:$4 sm:$0xff]  }
 0x5ef   :  { %v1751_v24 = vld [vmem:[#allocation2 + $0xac] ss:$16 sps:$4 sm:$0xff]  }
 0x5f9   :  { %v1808_v25 = vpop.eup %1807 }
 0x5fa   :  { %v1040_v28 = vadd.f32 1.0, %v1808_v25  ;;  %v1752_v25 = vld [vmem:[#allocation2 + $0x8c] ss:$16 sps:$4 sm:$0xff]  }
 0x5fb   :  { %v1810_v29 = vpop.eup %1809 }
 0x5fc   :  { %1811 = vrcp.f32 %v1040_v28  ;;  %v1041_v49 = vadd.f32 1.0, %v1810_v29  ;;  %v1753_v28 = vld [vmem:[#allocation2 + $0x6c] ss:$16 sps:$4 sm:$0xff]  }
 0x5fd   :  { %v1754_v29 = vld [vmem:[#allocation2 + $0x4c] ss:$16 sps:$4 sm:$0xff]  }
 0x609   :  { %v1812_v39 = vpop.eup %1811 }
 0x60a   :  { %v1047_v14 = vmul.f32 %v1812_v39, %v1046_v41  ;;  %v1755_v41 = vld [vmem:[#allocation2 + $0x2c] ss:$16 sps:$4 sm:$0xff]  }
 0x60b   :  { %v1756_v39 = vld [vmem:[#allocation2 + $0xc] ss:$16 sps:$4 sm:$0xff]  }
 0x60c   :  { %v1048_v48 = vadd.f32 %v1047_v14, %v2113_v58  ;;  %v1840_v58 = vld [vmem:[#allocation2 + $0xc4] ss:$16 sps:$4 sm:$0xff]  }
 0x60e   :  { %1813 = vtanh.f32 %v1048_v48 }
 0x60f   :  { %1815 = vrcp.f32 %v1041_v49  ;;  %v2407_v49 = vld [vmem:[#allocation8_spill] sm:$0xff] }
 0x61b   :  { %v1814_v60 = vpop.eup %1813 }
 0x61c   :  { %v1050_v55 = vsub.f32 %v2301_v51, %v1814_v60  ;;  %v1816_v54 = vpop.eup %1815 }
 0x61e   :  { %v1051_v37 = vmul.f32 %v1816_v54, %v1050_v55 }
 0x620   :  { %v2344_v3 = vadd.f32 %v1814_v60, %v1051_v37 }
 0x622   :  { %v1053_v12 = vpack.c.bf16 %v2344_v3, %v2344_v3 }
 0x624   :  { %1087 = vmatmul.mubr.bf16.vlgmr.msra.gmra.mxu0 %v1053_v12  ;;  %1648 = vmatmul.mubr.bf16.vlgmr.msra.gmra.mxu1 %v1053_v12 }
 0x625   :  { %1158 = vmatpush1.bf16.msra.mxu0 %v1838_v38  ;;  %1652 = vmatpush3.bf16.msra.mxu1 %v1839_v59 }
 0x626   :  { %1159 = vmatprep.subr.bf16.mxu0 %v1840_v58  ;;  %1653 = vmatprep.subr.bf16.mxu1 %v2403_v20 }
 0x627   :  { %1189 = vmatprep.mubr.bf16.mxu0 %v2404_v53  ;;  %1667 = vmatprep.mubr.msk.bf16.mxu1 %vm1881_vm1, %v2403_v20  ;;  %v1846_v53 = vld [vmem:[#allocation2 + $0x80] ss:$16 sps:$4 sm:$0xff]  }
 0x629   :  { %1160 = vmatpush1.bf16.msra.mxu0 %v1841_v47  ;;  %1654 = vmatpush3.bf16.msra.mxu1 %v1842_v19 }
 0x62a   :  { %1161 = vmatprep.subr.bf16.mxu0 %v1843_v57  ;;  %1655 = vmatprep.subr.bf16.mxu1 %v2403_v20 }
 0x62d   :  { %1162 = vmatpush1.bf16.msra.mxu0 %v1844_v43  ;;  %1656 = vmatpush3.bf16.msra.mxu1 %v1992_v26  ;;  %v1850_v26 = vld [vmem:[#allocation2 + $0x40] ss:$16 sps:$4 sm:$0xff]  }
 0x62e   :  { %1163 = vmatprep.subr.bf16.mxu0 %v1845_v1  ;;  %1657 = vmatprep.subr.bf16.mxu1 %v2403_v20 }
 0x631   :  { %1164 = vmatpush1.bf16.msra.mxu0 %v1846_v53  ;;  %1658 = vmatpush3.bf16.msra.mxu1 %v2006_v30  ;;  %v1852_v30 = vld [vmem:[#allocation2 + $0x20] ss:$16 sps:$4 sm:$0xff]  }
 0x632   :  { %1165 = vmatprep.subr.bf16.mxu0 %v1847_v2  ;;  %1659 = vmatprep.subr.bf16.mxu1 %v2403_v20  ;;  %v2408_v2 = vld [vmem:[#allocation6_spill] sm:$0xff] }
 0x635   :  { %1166 = vmatpush1.bf16.msra.mxu0 %v1848_v42  ;;  %1660 = vmatpush3.bf16.msra.mxu1 %v2018_v32 }
 0x636   :  { %1167 = vmatprep.subr.bf16.mxu0 %v1849_v0  ;;  %1661 = vmatprep.subr.bf16.mxu1 %v2403_v20 }
 0x639   :  { %1168 = vmatpush1.bf16.msra.mxu0 %v1850_v26  ;;  %1662 = vmatpush3.bf16.msra.mxu1 %v2023_v33 }
 0x63a   :  { %1169 = vmatprep.subr.bf16.mxu0 %v1851_v45  ;;  %1663 = vmatprep.subr.bf16.mxu1 %v2403_v20 }
 0x63d   :  { %1170 = vmatpush1.bf16.msra.mxu0 %v1852_v30  ;;  %1664 = vmatpush3.bf16.msra.mxu1 %v2031_v34 }
 0x63e   :  { %1171 = vmatprep.subr.bf16.mxu0 %v1853_v50  ;;  %1665 = vmatprep.subr.bf16.mxu1 %v2403_v20 }
 0x641   :  { %1172 = vmatpush1.bf16.msra.mxu0 %v2013_v31  ;;  %1666 = vmatpush3.bf16.msra.mxu1 %v2037_v35 }
 0x642   :  { %1671 = vmatprep.subr.bf16.mxu0 %v2403_v20 }
 0x6e4   :  { %v1088_v32 = vpop.f32.mrf.mxu0  ;;  %v1129_v33 = vpop.f32.mrf.mxu1 }
 0x6e5   :  { %v1135_v6 = vadd.f32 %v1088_v32, %v2107_v44  ;;  %v1149_v61 = vadd.f32 %v2122_v40, %v1129_v33  ;;  %v1403_v33 = vld [vmem:[%s2393_s3 + $0x4] ss:$0 sm:$0xff] }
 0x6e6   :  { %v1090_v11 = vpop.f32.mrf.mxu0  ;;  %v1649_v52 = vpop.f32.mrf.mxu1 }
 0x6e7   :  { %v1399_v63 = vmul.f32 -1.442695, %v1135_v6  ;;  %v1136_v56 = vadd.f32 %v1090_v11, %v2405_v27 }
 0x6e8   :  { %v1092_v62 = vpop.f32.mrf.mxu0  ;;  %v1132_v46 = vpop.f32.mrf.mxu1 }
 0x6e9   :  { %1817 = vpow2.f32 %v1399_v63  ;;  %v1400_v4 = vmul.f32 -1.442695, %v1136_v56 }
 0x6ea   :  { %v1093_v34 = vpop.f32.mrf.mxu0  ;;  %v1650_v36 = vpop.f32.mrf.mxu1 }
 0x6eb   :  { %1819 = vpow2.f32 %v1400_v4 }
 0x6f6   :  { %v1818_v31 = vpop.eup %1817 }
 0x6f7   :  { %v1143_v51 = vadd.f32 1.0, %v1818_v31 }
 0x6f8   :  { %v1820_v35 = vpop.eup %1819 }
 0x6f9   :  { %1821 = vrcp.f32 %v1143_v51  ;;  %v1144_v10 = vadd.f32 1.0, %v1820_v35 }
 0x706   :  { %v1822_v7 = vpop.eup %1821 }
 0x707   :  { %v1150_v44 = vmul.f32 %v1822_v7, %v1149_v61 }
 0x709   :  { %v1151_v9 = vadd.f32 %v1150_v44, %v2406_v8 }
 0x70b   :  { %1823 = vtanh.f32 %v1151_v9 }
 0x70c   :  { %1825 = vrcp.f32 %v1144_v10 }
 0x718   :  { %v1824_v13 = vpop.eup %1823 }
 0x719   :  { %v1153_v15 = vsub.f32 %v2344_v3, %v1824_v13  ;;  %v1826_v16 = vpop.eup %1825 }
 0x71b   :  { %v1154_v17 = vmul.f32 %v1826_v16, %v1153_v15 }
 0x71d   :  { %v1155_v18 = vadd.f32 %v1824_v13, %v1154_v17 }
 0x71f   :  { %v1156_v21 = vpack.c.bf16 %v1155_v18, %v1155_v18 }
 0x721   :  { %1190 = vmatmul.mubr.bf16.vlgmr.msra.gmra.mxu0 %v1156_v21  ;;  %1668 = vmatmul.mubr.bf16.vlgmr.msra.gmra.mxu1 %v1156_v21 }
 0x722   :  { %1687 = vmatprep.mubr.msk.bf16.mxu0 %vm1881_vm1, %v2403_v20  ;;  %1672 = vmatpush3.bf16.msra.mxu0 %v1749_v22 }
 0x723   :  { %1673 = vmatprep.subr.bf16.mxu0 %v2403_v20 }
 0x726   :  { %1674 = vmatpush3.bf16.msra.mxu0 %v1750_v23 }
 0x727   :  { %1675 = vmatprep.subr.bf16.mxu0 %v2403_v20 }
 0x72a   :  { %1676 = vmatpush3.bf16.msra.mxu0 %v1751_v24 }
 0x72b   :  { %1677 = vmatprep.subr.bf16.mxu0 %v2403_v20 }
 0x72e   :  { %1678 = vmatpush3.bf16.msra.mxu0 %v1752_v25 }
 0x72f   :  { %1679 = vmatprep.subr.bf16.mxu0 %v2403_v20 }
 0x732   :  { %1680 = vmatpush3.bf16.msra.mxu0 %v1753_v28 }
 0x733   :  { %1681 = vmatprep.subr.bf16.mxu0 %v2403_v20 }
 0x736   :  { %1682 = vmatpush3.bf16.msra.mxu0 %v1754_v29 }
 0x737   :  { %1683 = vmatprep.subr.bf16.mxu0 %v2403_v20 }
 0x73a   :  { %1684 = vmatpush3.bf16.msra.mxu0 %v1755_v41 }
 0x73b   :  { %1685 = vmatprep.subr.bf16.mxu0 %v2403_v20 }
 0x73e   :  { %1686 = vmatpush3.bf16.msra.mxu0 %v1756_v39 }
 0x7e1   :  { %v1191_v14 = vpop.f32.mrf.mxu0  ;;  %v1232_v48 = vpop.f32.mrf.mxu1 }
 0x7e2   :  { %v1238_v60 = vadd.f32 %v1191_v14, %v2407_v49  ;;  %v1252_v43 = vadd.f32 %v2122_v40, %v1232_v48 }
 0x7e3   :  { %v1193_v55 = vpop.f32.mrf.mxu0  ;;  %v1669_v54 = vpop.f32.mrf.mxu1 }
 0x7e4   :  { %v1401_v37 = vmul.f32 -1.442695, %v1238_v60  ;;  %v1239_v58 = vadd.f32 %v1193_v55, %v2117_v5 }
 0x7e5   :  { %v1195_v3 = vpop.f32.mrf.mxu0  ;;  %v1235_v12 = vpop.f32.mrf.mxu1 }
 0x7e6   :  { %1827 = vpow2.f32 %v1401_v37  ;;  %v1402_v47 = vmul.f32 -1.442695, %v1239_v58 }
 0x7e7   :  { %v1196_v38 = vpop.f32.mrf.mxu0  ;;  %v1670_v59 = vpop.f32.mrf.mxu1 }
 0x7e8   :  { %1829 = vpow2.f32 %v1402_v47 }
 0x7f3   :  { %v1828_v19 = vpop.eup %1827 }
 0x7f4   :  { %v1246_v57 = vadd.f32 1.0, %v1828_v19 }
 0x7f5   :  { %v1830_v20 = vpop.eup %1829 }
 0x7f6   :  { %1831 = vrcp.f32 %v1246_v57  ;;  %v1247_v0 = vadd.f32 1.0, %v1830_v20 }
 0x803   :  { %v1832_v1 = vpop.eup %1831 }
 0x804   :  { %v1253_v53 = vmul.f32 %v1832_v1, %v1252_v43 }
 0x806   :  { %v1254_v42 = vadd.f32 %v1253_v53, %v2408_v2 }
 0x808   :  { %1833 = vtanh.f32 %v1254_v42 }
 0x809   :  { %1835 = vrcp.f32 %v1247_v0 }
 0x815   :  { %v1834_v26 = vpop.eup %1833 }
 0x816   :  { %v1256_v45 = vsub.f32 %v1155_v18, %v1834_v26  ;;  %v1836_v30 = vpop.eup %1835 }
 0x818   :  { %v1257_v50 = vmul.f32 %v1836_v30, %v1256_v45 }
 0x81a   :  { %v1258_v5 = vadd.f32 %v1834_v26, %v1257_v50 }
 0x81c   :  { %v1259_v32 = vpack.c.bf16 %v1258_v5, %v1258_v5 }
 0x81e   :  { %1688 = vmatmul.mubr.bf16.vlgmr.msra.gmra.mxu0 %v1259_v32 }
 0x8de   :  { %v1332_v6 = vpop.f32.mrf.mxu0 }
 0x8df   :  { %v1333_v40 = vadd.f32 %v1403_v33, %v1332_v6 }
 0x8e0   :  { %v1689_v11 = vpop.f32.mrf.mxu0 }
 0x8e1   :  { %1338 = vst [vmem:[%s2394_s4] sm:$0xff] %v1333_v40 }
 0x8e2   :  { %v1335_v52 = vpop.f32.mrf.mxu0 }
 0x8e4   :  { %v1690_v63 = vpop.f32.mrf.mxu0 }
 0x8e5   :  { %1343 = vsyncpa [#allocation3], 1 }

</bundles_post_ra>
